<compile_context>
chip_gen: v7x
topology: tpu7x:2x2x1
jax: 0.10.0
libtpu: 0.0.40
codegen_flags: <defaults>
</compile_context>

<pallas_src>
import jax
import jax.numpy as jnp
from jax.experimental import pallas as pl
from jax.experimental.pallas import tpu as pltpu

LANE = 128      # TPU lane width
SUBLANE = 8     # f32 sublane tile


def _round_up(x, m):
    return ((x + m - 1) // m) * m


# ----------------------------- Pallas kernel ------------------------------ #

def _make_tcn_kernel(num_input, num_channels, kernel_size, seq_len, cp, out_p,
                     mxu_dtype):
    K = kernel_size
    L = seq_len
    n_blocks = len(num_channels)

    def causal_conv(hin, w2d, brow, dilation, cur_l):
        """One causal dilated conv as a single fused MXU matmul.

        hin:  (cur_l, cp)  f32 activation (zero in padding lanes)
        w2d:  (K*cp, cp)   packed weight, tap k in rows [k*cp, k*cp + cin)
        brow: (1, cp)      f32 bias row
        """
        shifts = [(K - 1 - k) * dilation for k in range(K)]
        live = [s for s in shifts if s < cur_l]        # dead taps see only zeros
        k0 = K - len(live)                             # dead taps are a k-prefix
        s_max = max(live)
        # Zero-history prefix rounded to a sublane multiple, so the concat is
        # tile-aligned.  Per-tap static slices of this SSA value replace the old
        # scratch store -> unaligned load round trip (no vst, no RAW dependency).
        pad8 = _round_up(s_max, SUBLANE) if s_max > 0 else 0
        if pad8 > 0:
            hpad = jnp.concatenate(
                [jnp.zeros((pad8, cp), jnp.float32), hin], axis=0)
        else:
            hpad = hin
        parts = []
        for s in live:                                  # k order == weight-row order
            if s == 0:
                parts.append(hin)
            else:
                parts.append(jax.lax.slice_in_dim(
                    hpad, pad8 - s, pad8 - s + cur_l, axis=0))
        # Lane concat at 128-lane offsets -> pure layout, one wide matmul.
        im2col = parts[0] if len(parts) == 1 else jnp.concatenate(parts, axis=1)
        w_use = w2d if k0 == 0 else w2d[k0 * cp:, :]
        o = jnp.dot(im2col.astype(mxu_dtype), w_use,
                    preferred_element_type=jnp.float32)
        return o + brow

    def kernel(x_ref, w_ref, b_ref, wh_ref, out_ref):
        # x_ref:   (1, L, cp)      one batch example (grid over batch)
        # w_ref:   (NW, K*cp, cp)  packed conv / downsample weights (mxu dtype)
        # b_ref:   (NB, CB)        f32 bias rows
        # wh_ref:  (cp, out_p)     linear head weight (mxu dtype)
        # out_ref: (1, 1, out_p)
        h = x_ref[0].astype(jnp.float32)                # (L, cp)
        cur_l = L
        wi = 0
        bi = 0
        cin = num_input
        # TODO(synk): for large L, keep h/o in a ping-pong VMEM scratch (or move
        # layers to a grid axis) instead of SSA values live across the unrolled loop.
        for i, cout in enumerate(num_channels):
            d = 2 ** i
            if i == n_blocks - 1:
                # Only output[:, :, -1] feeds the head: restrict the last block
                # to the receptive field of the final time step.
                rf = 2 * (K - 1) * d + 1
                win = min(cur_l, _round_up(rf, SUBLANE))
                if win < cur_l:
                    h = jax.lax.slice_in_dim(h, cur_l - win, cur_l, axis=0)
                    cur_l = win

            w1 = w_ref[wi]
            w2 = w_ref[wi + 1]
            b1 = b_ref[bi:bi + 1, :cp]
            b2 = b_ref[bi + 1:bi + 2, :cp]
            wi += 2
            bi += 2
            # conv -> chomp -> relu -> dropout, twice
            # TODO(synk): dropout implemented as identity (eval-mode semantics).
            o = jnp.maximum(causal_conv(h, w1, b1, d, cur_l), 0.0)
            o = jnp.maximum(causal_conv(o, w2, b2, d, cur_l), 0.0)

            if cin != cout:          # 1x1 downsample conv on the residual path
                wd = w_ref[wi][:cp, :]
                bd = b_ref[bi:bi + 1, :cp]
                wi += 1
                bi += 1
                res = jnp.dot(h.astype(mxu_dtype), wd,
                              preferred_element_type=jnp.float32) + bd
            else:
                res = h
            h = jnp.maximum(o + res, 0.0)
            cin = cout

        # output[:, :, -1] -> last time step, then Linear head.
        last = jax.lax.slice_in_dim(h, cur_l - 1, cur_l, axis=0)   # (1, cp)
        bh = b_ref[bi:bi + 1, :out_p]
        pred = jnp.dot(last.astype(mxu_dtype), wh_ref[...],
                       preferred_element_type=jnp.float32) + bh
        out_ref[...] = pred.reshape(1, 1, out_p).astype(out_ref.dtype)

    return kernel


# --------------------------- parameter packing ------------------------------ #

def _pack_params(blocks, wl, bl, *, num_input, num_channels, kernel_size,
                 cp, out_p, mxu_dtype):
    """PyTorch-layout params -> packed, lane-padded, matmul-ready kernel arrays."""
    K = kernel_size
    KC = K * cp
    CB = max(cp, out_p)

    def conv_pack(w):
        # torch Conv1d weight (cout, cin, K) -> (K*cp, cp); tap k occupies rows
        # [k*cp, k*cp + cin), so one matmul contracts over all taps at once.
        cout, cin, _ = w.shape
        wp = jnp.zeros((KC, cp), jnp.float32)
        for k in range(K):
            wp = wp.at[k * cp:k * cp + cin, :cout].set(
                jnp.transpose(w[:, :, k]).astype(jnp.float32))
        return wp

    def bias_row(b):
        b = b.astype(jnp.float32).reshape(1, -1)
        return jnp.pad(b, ((0, 0), (0, CB - b.shape[1])))

    w_list, b_list = [], []
    cin = num_input
    for i, cout in enumerate(num_channels):
        blk = blocks[i]
        w_list.append(conv_pack(blk["w1"]))
        w_list.append(conv_pack(blk["w2"]))
        b_list.append(bias_row(blk["b1"]))
        b_list.append(bias_row(blk["b2"]))
        if cin != cout:
            wd = jnp.zeros((KC, cp), jnp.float32)
            wd = wd.at[:cin, :cout].set(
                jnp.transpose(blk["wd"][:, :, 0]).astype(jnp.float32))
            w_list.append(wd)
            b_list.append(bias_row(blk["bd"]))
        cin = cout

    w_all = jnp.stack(w_list).astype(mxu_dtype)                   # (NW, K*cp, cp)
    b_all = jnp.concatenate(b_list + [bias_row(bl)], axis=0)      # (NB, CB) f32
    w_head = jnp.zeros((cp, out_p), jnp.float32)
    w_head = w_head.at[:cin, :wl.shape[0]].set(
        jnp.transpose(wl).astype(jnp.float32)).astype(mxu_dtype)  # (cp, out_p)
    return w_all, b_all, w_head


def _vmem_limit_bytes(L, cp, out_p, n_w, n_b, K, w_itemsize):
    """Derive the scoped-VMEM limit from the actual resident footprint (v7x: 64 MiB)."""
    CB = max(cp, out_p)
    resident = (n_w * K * cp * cp + cp * out_p) * w_itemsize + n_b * CB * 4
    blocks = L * cp * 4 + out_p * 4                 # per-step input/output block
    live = 8 * L * K * cp * 4                       # im2col + live activations
    need = 2 * (resident + blocks) + live           # x2: double-buffered pipeline
    assert need < 60 * (1 << 20), (
        "All-resident layout exceeds the v7x 64 MiB VMEM budget; "
        "switch to a pipelined grid over the time axis.")
    return int(min(64 << 20, max(16 << 20, 2 * need)))


# ------------------------------ JAX wrapper -------------------------------- #

def tcn_model_forward(inputs, blocks, wl, bl, *, num_input, num_channels,
                      kernel_size, output_size, mxu_dtype=jnp.bfloat16):
    B = inputs.shape[0]
    x = inputs.reshape(B, num_input, -1)            # PyTorch Conv1d layout (B, C, L)
    L = x.shape[-1]

    cp = _round_up(max(num_input, max(num_channels)), LANE)   # common lane pad
    out_p = _round_up(output_size, LANE)
    CB = max(cp, out_p)

    # kernel layout: (B, L, cp) -- time on sublanes, lane-padded channels.
    x_blc = jnp.transpose(x, (0, 2, 1)).astype(jnp.float32)
    x_blc = jnp.pad(x_blc, ((0, 0), (0, 0), (0, cp - num_input)))

    w_all, b_all, w_head = _pack_params(
        blocks, wl, bl, num_input=num_input, num_channels=num_channels,
        kernel_size=kernel_size, cp=cp, out_p=out_p, mxu_dtype=mxu_dtype)
    NW, NB = int(w_all.shape[0]), int(b_all.shape[0])

    kernel = _make_tcn_kernel(num_input, list(num_channels), kernel_size,
                              L, cp, out_p, mxu_dtype)
    vmem_limit = _vmem_limit_bytes(L, cp, out_p, NW, NB, kernel_size,
                                   jnp.dtype(mxu_dtype).itemsize)

    out = pl.pallas_call(
        kernel,
        out_shape=jax.ShapeDtypeStruct((B, 1, out_p), jnp.float32),
        grid=(B,),                                  # batch sharded across TCs (v7x)
        in_specs=[
            pl.BlockSpec((1, L, cp), lambda b: (b, 0, 0)),
            pl.BlockSpec((NW, kernel_size * cp, cp), lambda b: (0, 0, 0)),
            pl.BlockSpec((NB, CB), lambda b: (0, 0)),
            pl.BlockSpec((cp, out_p), lambda b: (0, 0)),
        ],
        out_specs=pl.BlockSpec((1, 1, out_p), lambda b: (b, 0, 0)),
        compiler_params=pltpu.CompilerParams(
            dimension_semantics=("parallel",),
            vmem_limit_bytes=vmem_limit),
    )(x_blc, w_all, b_all, w_head)

    # out[:, :, -1] of the TCN -> Linear -> .squeeze(), matching the torch module.
    return jnp.squeeze(out[:, 0, :output_size])


# ---------------------- deterministic parameter init ----------------------- #

def init_params(key, num_input, num_channels, kernel_size, output_size):
    blocks = []
    cin = num_input
    keys = iter(jax.random.split(key, 6 * len(num_channels) + 2))
    for cout in num_channels:
        blk = {
            "w1": 0.1 * jax.random.normal(next(keys), (cout, cin, kernel_size), jnp.float32),
            "b1": 0.1 * jax.random.normal(next(keys), (cout,), jnp.float32),
            "w2": 0.1 * jax.random.normal(next(keys), (cout, cout, kernel_size), jnp.float32),
            "b2": 0.1 * jax.random.normal(next(keys), (cout,), jnp.float32),
        }
        if cin != cout:   # 1x1 downsample conv on the residual path
            blk["wd"] = 0.1 * jax.random.normal(next(keys), (cout, cin, 1), jnp.float32)
            blk["bd"] = 0.1 * jax.random.normal(next(keys), (cout,), jnp.float32)
        blocks.append(blk)
        cin = cout
    wl = 0.1 * jax.random.normal(next(keys), (output_size, cin), jnp.float32)
    bl = 0.1 * jax.random.normal(next(keys), (output_size,), jnp.float32)
    return blocks, wl, bl


# ------------------------- pure-JAX reference check ------------------------ #

def ref_forward(inputs, blocks, wl, bl, *, num_input, num_channels, kernel_size):
    B = inputs.shape[0]
    h = inputs.reshape(B, num_input, -1).astype(jnp.float32)   # (B, C, L)
    K = kernel_size

    def conv(x, w, b, d, pad):
        o = jax.lax.conv_general_dilated(
            x, w, window_strides=(1,), padding=[(pad, 0)], rhs_dilation=(d,),
            dimension_numbers=("NCH", "OIH", "NCH"))
        return o + b[None, :, None]

    for i, cout in enumerate(num_channels):
        d = 2 ** i
        blk = blocks[i]
        o = jax.nn.relu(conv(h, blk["w1"], blk["b1"], d, (K - 1) * d))
        o = jax.nn.relu(conv(o, blk["w2"], blk["b2"], d, (K - 1) * d))
        res = h if "wd" not in blk else conv(h, blk["wd"], blk["bd"], 1, 0)
        h = jax.nn.relu(o + res)
    last = h[:, :, -1]                       # (B, C_last)
    return jnp.squeeze(last @ wl.T + bl)


# ---------------------------------- main ----------------------------------- #

if __name__ == "__main__":
    B = 2
    num_input = 4
    L = 16
    num_channels = [8, 16]
    kernel_size = 3
    output_size = 1
    # dropout=0.2 in the torch module -> identity at inference time

    key = jax.random.PRNGKey(0)
    kx, kp = jax.random.split(key)
    inputs = jax.random.normal(kx, (B, num_input, L), jnp.float32)
    blocks, wl, bl = init_params(kp, num_input, num_channels, kernel_size, output_size)

    ref = ref_forward(inputs, blocks, wl, bl,
                      num_input=num_input, num_channels=num_channels,
                      kernel_size=kernel_size)
    ref = jax.block_until_ready(ref)

    # f32 MXU path: exact-semantics check at tight tolerance.
    pred_f32 = tcn_model_forward(
        inputs, blocks, wl, bl,
        num_input=num_input, num_channels=num_channels,
        kernel_size=kernel_size, output_size=output_size,
        mxu_dtype=jnp.float32)
    pred_f32 = jax.block_until_ready(pred_f32)
    assert pred_f32.shape == ref.shape, (pred_f32.shape, ref.shape)
    assert jnp.allclose(pred_f32, ref, atol=1e-4, rtol=1e-4), (pred_f32, ref)

    # bf16 MXU path (perf-preferred on v6e/v7x): f32 accumulation, looser tolerance.
    pred_bf16 = tcn_model_forward(
        inputs, blocks, wl, bl,
        num_input=num_input, num_channels=num_channels,
        kernel_size=kernel_size, output_size=output_size,
        mxu_dtype=jnp.bfloat16)
    pred_bf16 = jax.block_until_ready(pred_bf16)
    assert pred_bf16.shape == ref.shape, (pred_bf16.shape, ref.shape)
    assert jnp.allclose(pred_bf16, ref, atol=5e-2, rtol=5e-2), (pred_bf16, ref)

    print("KERNEL_OK")
</pallas_src>

<mosaic_0001>
module attributes {stable_mosaic.version = 11 : i64} {
  func.func @kernel(%arg0: i32, %arg1: memref<1x16x128xf32, #tpu.memory_space<vmem>>, %arg2: memref<6x384x128xf32, #tpu.memory_space<vmem>>, %arg3: memref<7x128xf32, #tpu.memory_space<vmem>>, %arg4: memref<128x128xf32, #tpu.memory_space<vmem>>, %arg5: memref<1x1x128xf32, #tpu.memory_space<vmem>>) attributes {dimension_semantics = [#tpu.dimension_semantics<parallel>], iteration_bounds = array<i64: 2>, scalar_prefetch = 0 : i64, scratch_operands = 0 : i64, tpu.core_type = #tpu.core_type<tc>, window_params = [{transform_indices = @transform_0, window_bounds = array<i64: 1, 16, 128>}, {pipeline_mode = #tpu.pipeline_mode<synchronous>, transform_indices = @transform_1, window_bounds = array<i64: 6, 384, 128>}, {pipeline_mode = #tpu.pipeline_mode<synchronous>, transform_indices = @transform_2, window_bounds = array<i64: 7, 128>}, {pipeline_mode = #tpu.pipeline_mode<synchronous>, transform_indices = @transform_3, window_bounds = array<i64: 128, 128>}, {transform_indices = @transform_4, window_bounds = array<i64: 1, 1, 128>}]} {
    %c0 = arith.constant 0 : index
    %c0_0 = arith.constant 0 : index
    %c0_1 = arith.constant 0 : index
    %0 = vector.load %arg1[%c0, %c0_0, %c0_1] : memref<1x16x128xf32, #tpu.memory_space<vmem>>, vector<1x16x128xf32>
    %1 = vector.shape_cast %0 : vector<1x16x128xf32> to vector<16x128xf32>
    %c0_2 = arith.constant 0 : index
    %c0_3 = arith.constant 0 : index
    %c0_4 = arith.constant 0 : index
    %2 = vector.load %arg2[%c0_2, %c0_3, %c0_4] : memref<6x384x128xf32, #tpu.memory_space<vmem>>, vector<1x384x128xf32>
    %3 = vector.shape_cast %2 : vector<1x384x128xf32> to vector<384x128xf32>
    %c1 = arith.constant 1 : index
    %c0_5 = arith.constant 0 : index
    %c0_6 = arith.constant 0 : index
    %4 = vector.load %arg2[%c1, %c0_5, %c0_6] : memref<6x384x128xf32, #tpu.memory_space<vmem>>, vector<1x384x128xf32>
    %5 = vector.shape_cast %4 : vector<1x384x128xf32> to vector<384x128xf32>
    %c0_7 = arith.constant 0 : index
    %c0_8 = arith.constant 0 : index
    %6 = vector.load %arg3[%c0_7, %c0_8] : memref<7x128xf32, #tpu.memory_space<vmem>>, vector<1x128xf32>
    %c1_9 = arith.constant 1 : index
    %c0_10 = arith.constant 0 : index
    %7 = vector.load %arg3[%c1_9, %c0_10] : memref<7x128xf32, #tpu.memory_space<vmem>>, vector<1x128xf32>
    %cst = arith.constant 0.000000e+00 : f32
    %8 = vector.broadcast %cst : f32 to vector<8x128xf32>
    %9 = tpu.concatenate %8, %1 in 0 : vector<8x128xf32>, vector<16x128xf32> -> vector<24x128xf32>
    %10 = vector.extract_strided_slice %9 {offsets = [6, 0], sizes = [16, 128], strides = [1, 1]} : vector<24x128xf32> to vector<16x128xf32>
    %11 = vector.extract_strided_slice %9 {offsets = [7, 0], sizes = [16, 128], strides = [1, 1]} : vector<24x128xf32> to vector<16x128xf32>
    %12 = tpu.concatenate %10, %11, %1 in 1 : vector<16x128xf32>, vector<16x128xf32>, vector<16x128xf32> -> vector<16x384xf32>
    %cst_11 = arith.constant dense<0.000000e+00> : vector<16x128xf32>
    %13 = tpu.matmul %12, %3, %cst_11 {dimension_numbers = #tpu.dot_dimension_numbers<[1], [0], [0], [1], [0, 0, 1, 1], [], []>} : vector<16x384xf32>, vector<384x128xf32>, vector<16x128xf32> -> vector<16x128xf32>
    %14 = vector.broadcast %6 : vector<1x128xf32> to vector<16x128xf32>
    %15 = arith.addf %13, %14 : vector<16x128xf32>
    %cst_12 = arith.constant 0.000000e+00 : f32
    %16 = vector.broadcast %cst_12 : f32 to vector<16x128xf32>
    %17 = arith.maximumf %15, %16 : vector<16x128xf32>
    %cst_13 = arith.constant 0.000000e+00 : f32
    %18 = vector.broadcast %cst_13 : f32 to vector<8x128xf32>
    %19 = tpu.concatenate %18, %17 in 0 : vector<8x128xf32>, vector<16x128xf32> -> vector<24x128xf32>
    %20 = vector.extract_strided_slice %19 {offsets = [6, 0], sizes = [16, 128], strides = [1, 1]} : vector<24x128xf32> to vector<16x128xf32>
    %21 = vector.extract_strided_slice %19 {offsets = [7, 0], sizes = [16, 128], strides = [1, 1]} : vector<24x128xf32> to vector<16x128xf32>
    %22 = tpu.concatenate %20, %21, %17 in 1 : vector<16x128xf32>, vector<16x128xf32>, vector<16x128xf32> -> vector<16x384xf32>
    %cst_14 = arith.constant dense<0.000000e+00> : vector<16x128xf32>
    %23 = tpu.matmul %22, %5, %cst_14 {dimension_numbers = #tpu.dot_dimension_numbers<[1], [0], [0], [1], [0, 0, 1, 1], [], []>} : vector<16x384xf32>, vector<384x128xf32>, vector<16x128xf32> -> vector<16x128xf32>
    %24 = vector.broadcast %7 : vector<1x128xf32> to vector<16x128xf32>
    %25 = arith.addf %23, %24 : vector<16x128xf32>
    %cst_15 = arith.constant 0.000000e+00 : f32
    %26 = vector.broadcast %cst_15 : f32 to vector<16x128xf32>
    %27 = arith.maximumf %25, %26 : vector<16x128xf32>
    %c2 = arith.constant 2 : index
    %c0_16 = arith.constant 0 : index
    %c0_17 = arith.constant 0 : index
    %28 = vector.load %arg2[%c2, %c0_16, %c0_17] : memref<6x384x128xf32, #tpu.memory_space<vmem>>, vector<1x384x128xf32>
    %29 = vector.shape_cast %28 : vector<1x384x128xf32> to vector<384x128xf32>
    %30 = vector.extract_strided_slice %29 {offsets = [0, 0], sizes = [128, 128], strides = [1, 1]} : vector<384x128xf32> to vector<128x128xf32>
    %c2_18 = arith.constant 2 : index
    %c0_19 = arith.constant 0 : index
    %31 = vector.load %arg3[%c2_18, %c0_19] : memref<7x128xf32, #tpu.memory_space<vmem>>, vector<1x128xf32>
    %cst_20 = arith.constant dense<0.000000e+00> : vector<16x128xf32>
    %32 = tpu.matmul %1, %30, %cst_20 {dimension_numbers = #tpu.dot_dimension_numbers<[1], [0], [0], [1], [0, 0, 1, 1], [], []>} : vector<16x128xf32>, vector<128x128xf32>, vector<16x128xf32> -> vector<16x128xf32>
    %33 = vector.broadcast %31 : vector<1x128xf32> to vector<16x128xf32>
    %34 = arith.addf %32, %33 : vector<16x128xf32>
    %35 = arith.addf %27, %34 : vector<16x128xf32>
    %cst_21 = arith.constant 0.000000e+00 : f32
    %36 = vector.broadcast %cst_21 : f32 to vector<16x128xf32>
    %37 = arith.maximumf %35, %36 : vector<16x128xf32>
    %c3 = arith.constant 3 : index
    %c0_22 = arith.constant 0 : index
    %c0_23 = arith.constant 0 : index
    %38 = vector.load %arg2[%c3, %c0_22, %c0_23] : memref<6x384x128xf32, #tpu.memory_space<vmem>>, vector<1x384x128xf32>
    %39 = vector.shape_cast %38 : vector<1x384x128xf32> to vector<384x128xf32>
    %c4 = arith.constant 4 : index
    %c0_24 = arith.constant 0 : index
    %c0_25 = arith.constant 0 : index
    %40 = vector.load %arg2[%c4, %c0_24, %c0_25] : memref<6x384x128xf32, #tpu.memory_space<vmem>>, vector<1x384x128xf32>
    %41 = vector.shape_cast %40 : vector<1x384x128xf32> to vector<384x128xf32>
    %c3_26 = arith.constant 3 : index
    %c0_27 = arith.constant 0 : index
    %42 = vector.load %arg3[%c3_26, %c0_27] : memref<7x128xf32, #tpu.memory_space<vmem>>, vector<1x128xf32>
    %c4_28 = arith.constant 4 : index
    %c0_29 = arith.constant 0 : index
    %43 = vector.load %arg3[%c4_28, %c0_29] : memref<7x128xf32, #tpu.memory_space<vmem>>, vector<1x128xf32>
    %cst_30 = arith.constant 0.000000e+00 : f32
    %44 = vector.broadcast %cst_30 : f32 to vector<8x128xf32>
    %45 = tpu.concatenate %44, %37 in 0 : vector<8x128xf32>, vector<16x128xf32> -> vector<24x128xf32>
    %46 = vector.extract_strided_slice %45 {offsets = [4, 0], sizes = [16, 128], strides = [1, 1]} : vector<24x128xf32> to vector<16x128xf32>
    %47 = vector.extract_strided_slice %45 {offsets = [6, 0], sizes = [16, 128], strides = [1, 1]} : vector<24x128xf32> to vector<16x128xf32>
    %48 = tpu.concatenate %46, %47, %37 in 1 : vector<16x128xf32>, vector<16x128xf32>, vector<16x128xf32> -> vector<16x384xf32>
    %cst_31 = arith.constant dense<0.000000e+00> : vector<16x128xf32>
    %49 = tpu.matmul %48, %39, %cst_31 {dimension_numbers = #tpu.dot_dimension_numbers<[1], [0], [0], [1], [0, 0, 1, 1], [], []>} : vector<16x384xf32>, vector<384x128xf32>, vector<16x128xf32> -> vector<16x128xf32>
    %50 = vector.broadcast %42 : vector<1x128xf32> to vector<16x128xf32>
    %51 = arith.addf %49, %50 : vector<16x128xf32>
    %cst_32 = arith.constant 0.000000e+00 : f32
    %52 = vector.broadcast %cst_32 : f32 to vector<16x128xf32>
    %53 = arith.maximumf %51, %52 : vector<16x128xf32>
    %cst_33 = arith.constant 0.000000e+00 : f32
    %54 = vector.broadcast %cst_33 : f32 to vector<8x128xf32>
    %55 = tpu.concatenate %54, %53 in 0 : vector<8x128xf32>, vector<16x128xf32> -> vector<24x128xf32>
    %56 = vector.extract_strided_slice %55 {offsets = [4, 0], sizes = [16, 128], strides = [1, 1]} : vector<24x128xf32> to vector<16x128xf32>
    %57 = vector.extract_strided_slice %55 {offsets = [6, 0], sizes = [16, 128], strides = [1, 1]} : vector<24x128xf32> to vector<16x128xf32>
    %58 = tpu.concatenate %56, %57, %53 in 1 : vector<16x128xf32>, vector<16x128xf32>, vector<16x128xf32> -> vector<16x384xf32>
    %cst_34 = arith.constant dense<0.000000e+00> : vector<16x128xf32>
    %59 = tpu.matmul %58, %41, %cst_34 {dimension_numbers = #tpu.dot_dimension_numbers<[1], [0], [0], [1], [0, 0, 1, 1], [], []>} : vector<16x384xf32>, vector<384x128xf32>, vector<16x128xf32> -> vector<16x128xf32>
    %60 = vector.broadcast %43 : vector<1x128xf32> to vector<16x128xf32>
    %61 = arith.addf %59, %60 : vector<16x128xf32>
    %cst_35 = arith.constant 0.000000e+00 : f32
    %62 = vector.broadcast %cst_35 : f32 to vector<16x128xf32>
    %63 = arith.maximumf %61, %62 : vector<16x128xf32>
    %c5 = arith.constant 5 : index
    %c0_36 = arith.constant 0 : index
    %c0_37 = arith.constant 0 : index
    %64 = vector.load %arg2[%c5, %c0_36, %c0_37] : memref<6x384x128xf32, #tpu.memory_space<vmem>>, vector<1x384x128xf32>
    %65 = vector.shape_cast %64 : vector<1x384x128xf32> to vector<384x128xf32>
    %66 = vector.extract_strided_slice %65 {offsets = [0, 0], sizes = [128, 128], strides = [1, 1]} : vector<384x128xf32> to vector<128x128xf32>
    %c5_38 = arith.constant 5 : index
    %c0_39 = arith.constant 0 : index
    %67 = vector.load %arg3[%c5_38, %c0_39] : memref<7x128xf32, #tpu.memory_space<vmem>>, vector<1x128xf32>
    %cst_40 = arith.constant dense<0.000000e+00> : vector<16x128xf32>
    %68 = tpu.matmul %37, %66, %cst_40 {dimension_numbers = #tpu.dot_dimension_numbers<[1], [0], [0], [1], [0, 0, 1, 1], [], []>} : vector<16x128xf32>, vector<128x128xf32>, vector<16x128xf32> -> vector<16x128xf32>
    %69 = vector.broadcast %67 : vector<1x128xf32> to vector<16x128xf32>
    %70 = arith.addf %68, %69 : vector<16x128xf32>
    %71 = arith.addf %63, %70 : vector<16x128xf32>
    %cst_41 = arith.constant 0.000000e+00 : f32
    %72 = vector.broadcast %cst_41 : f32 to vector<16x128xf32>
    %73 = arith.maximumf %71, %72 : vector<16x128xf32>
    %74 = vector.extract_strided_slice %73 {offsets = [15, 0], sizes = [1, 128], strides = [1, 1]} : vector<16x128xf32> to vector<1x128xf32>
    %c6 = arith.constant 6 : index
    %c0_42 = arith.constant 0 : index
    %75 = vector.load %arg3[%c6, %c0_42] : memref<7x128xf32, #tpu.memory_space<vmem>>, vector<1x128xf32>
    %c0_43 = arith.constant 0 : index
    %c0_44 = arith.constant 0 : index
    %76 = vector.load %arg4[%c0_43, %c0_44] : memref<128x128xf32, #tpu.memory_space<vmem>>, vector<128x128xf32>
    %cst_45 = arith.constant dense<0.000000e+00> : vector<1x128xf32>
    %77 = tpu.matmul %74, %76, %cst_45 {dimension_numbers = #tpu.dot_dimension_numbers<[1], [0], [0], [1], [0, 0, 1, 1], [], []>} : vector<1x128xf32>, vector<128x128xf32>, vector<1x128xf32> -> vector<1x128xf32>
    %78 = arith.addf %77, %75 : vector<1x128xf32>
    %79 = vector.shape_cast %78 : vector<1x128xf32> to vector<1x1x128xf32>
    %c0_46 = arith.constant 0 : index
    %c0_47 = arith.constant 0 : index
    %c0_48 = arith.constant 0 : index
    %80 = vector.load %arg5[%c0_46, %c0_47, %c0_48] : memref<1x1x128xf32, #tpu.memory_space<vmem>>, vector<1x1x128xf32>
    tpu.vector_store %arg5[%c0_46, %c0_47, %c0_48], %79 {strides = array<i32>} : memref<1x1x128xf32, #tpu.memory_space<vmem>>, vector<1x1x128xf32>,
    return
  }
  func.func @transform_0(%arg0: i32) -> (i32, i32, i32) {
    %c0_i32 = arith.constant 0 : i32
    %c0_i32_0 = arith.constant 0 : i32
    %c0_i32_1 = arith.constant 0 : i32
    return %arg0, %c0_i32, %c0_i32_0 : i32, i32, i32
  }
  func.func @transform_1(%arg0: i32) -> (i32, i32, i32) {
    %c0_i32 = arith.constant 0 : i32
    %c0_i32_0 = arith.constant 0 : i32
    %c0_i32_1 = arith.constant 0 : i32
    %c0_i32_2 = arith.constant 0 : i32
    return %c0_i32, %c0_i32_0, %c0_i32_1 : i32, i32, i32
  }
  func.func @transform_2(%arg0: i32) -> (i32, i32) {
    %c0_i32 = arith.constant 0 : i32
    %c0_i32_0 = arith.constant 0 : i32
    %c0_i32_1 = arith.constant 0 : i32
    return %c0_i32, %c0_i32_0 : i32, i32
  }
  func.func @transform_3(%arg0: i32) -> (i32, i32) {
    %c0_i32 = arith.constant 0 : i32
    %c0_i32_0 = arith.constant 0 : i32
    %c0_i32_1 = arith.constant 0 : i32
    return %c0_i32, %c0_i32_0 : i32, i32
  }
  func.func @transform_4(%arg0: i32) -> (i32, i32, i32) {
    %c0_i32 = arith.constant 0 : i32
    %c0_i32_0 = arith.constant 0 : i32
    %c0_i32_1 = arith.constant 0 : i32
    return %arg0, %c0_i32, %c0_i32_0 : i32, i32, i32
  }
}

</mosaic_0001>

<bundles_post_ra>
// kernel: tpu_custom_call.1
= control target key start
LH: loop header
LB: loop body
LE: loop exit
PB: predicated region body
PF: predicated region fallthrough
CT: control target
= control target key end

     0   :  { %9 = vsyncpa [#allocation3], 0  ;;  %s3151_s0 = inlined_call_operand.hbm [shape: f32[2,16,128], index: 0, kind: input, shape index: {}]   ;;  %s3152_s1 = inlined_call_operand.hbm [shape: f32[6,384,128], index: 1, kind: input, shape index: {}]   ;;  %s3153_s2 = inlined_call_operand.hbm [shape: f32[7,128], index: 2, kind: input, shape index: {}]   ;;  %s3154_s3 = inlined_call_operand.hbm [shape: f32[128,128], index: 3, kind: input, shape index: {}]   ;;  %s3155_s4 = inlined_call_operand.hbm [shape: f32[2,1,128], index: 4, kind: output, shape index: {}]  }
   0x1   :  { %11 = vsyncpa [#allocation3 + $0x1], 0 }
   0x2   :  { %12 = vsyncpa [#allocation6], 0 }
   0x3   :  { %13 = vsyncpa [#allocation9], 0 }
   0x4   :  { %14 = vsyncpa [#allocation4], 0 }
   0x5   :  { %16 = vsyncpa [#allocation4 + $0x1], 0  ;;  %s2793_s15 = smov 0   ;;  %s2795_s16 = smov 0  }
   0x6   :  { %s2797_s17 = smov 0   ;;  %s2799_s18 = smov 0  }
   0x7 LB: > { %s2814_s19 = sadd.s32 4294967295, %s2756_s18   ;;  %s1596_s20 = sadd.s32 4294967294, %s2756_s18   ;;  %s2756_s18 = sphi %s2799_s18, %s3178_s18   ;;  %s2752_s17 = sphi %s2797_s17, %s3177_s17   ;;  %s2748_s16 = sphi %s2795_s16, %s3176_s16   ;;  %s2744_s15 = sphi %s2793_s15, %s3175_s15  }
   0x8   : > { %p42_p0 = scmp.ne.s32.totalorder %s2748_s16, %s2744_s15  ;;  %p3156_p1 = scmp.eq.s32.totalorder %s2814_s19, 0 }
   0x9   : > { %p135_p3 = scmp.eq.s32.totalorder %s1596_s20, 1  ;;  %p1597_p5 = scmp.ge.s32.totalorder %s2756_s18, 1 }
   0xa   : > { %p2823_p4 = por %p3156_p1, %p42_p0  ;;  %p142_p7 = scmp.lt.s32.totalorder %s2756_s18, 3 }
   0xb   : > { %p2828_p6 = por %p135_p3, %p42_p0  ;;  %s2758_s24 = smov [#allocation5]  }
   0xc   : > { %s3159_s21 = scalar_select %p2823_p4, 1, 0 }
   0xd   : > { %s3160_s22 = scalar_select %p2828_p6, 1, 0 }
   0xe   : > { %p2833_p8 = pnand %p1597_p5, %p142_p7  ;;  %s154_s25 = sshll.u32 %s2758_s24, 4  ;;  %s2837_s25 = int_to_ptr.vmem [resolvable:$true] %s154_s25 }
   0xf   : > { %s2759_s27 = smov [#allocation7]   ;;  %s2760_s29 = smov [#allocation8]  }
  0x10   : > { %s3161_s23 = scalar_select %p2833_p8, 1, 0 }
  0x11   : > { %p2502_p9 = pneg %p2833_p8  ;;  %s168_s28 = sshll.u32 %s2759_s27, 4  ;;  %s2848_s28 = int_to_ptr.vmem [resolvable:$true] %s168_s28 }
  0x12   : > { %s2850_s30 = sshll.u32 %s2760_s29, 4  ;;  %s2568_s7 = scalar_lea.hbm %s3152_s1, 36864  ;;  %s179_s30 = int_to_ptr.vmem [resolvable:$true] %s2850_s30 }
  0x13   : > { %p2844_p11 = pnand %p2502_p9, %p3156_p1  ;;  %p2569_p12 = scmp.ne.s32.totalorder %s3152_s1, %s2568_s7 }
  0x14   : > { %p2575_p5 = scmp.lt.u32.totalorder %s2568_s7, %s3152_s1 }
  0x15   : > { %p2860_p13 = pneg %p2844_p11 }
  0x17   : > { %p2571_p0 = pnand %p2860_p13, %p2569_p12 }
  0x19   : > { %p2572_p3 = pneg %p2571_p0 }
  0x1b   : > { %p2577_p7 = pnand %p2575_p5, %p2572_p3 }
  0x1d   : > { %2580 = shalt.err (!%p2577_p7)
}
  0x1e   : > { %s2581_s13 = scalar_lea.vmem %s2837_s25, 36864  ;;  %p2589_p2 = scmp.lt.s32.totalorder %s2837_s25, %s2837_s25 }
  0x1f   : > { %p2582_p9 = scmp.ne.s32.totalorder %s2837_s25, %s2581_s13  ;;  %p2590_p6 = scmp.lt.s32.totalorder %s2581_s13, %s2581_s13 }
  0x21   : > { %p2584_p10 = pnand %p2582_p9, %p2860_p13  ;;  %p2591_p12 = por %p2590_p6, %p2589_p2 }
  0x23   : > { %p2585_p1 = pneg %p2584_p10 }
  0x25   : > { %p2592_p0 = pnand %p2591_p12, %p2585_p1 }
  0x27   : > { %2595 = shalt.err (!%p2592_p0)
}
  0x28   : > { %s2761_s14 = smov 128   ;;  %s2762_s20 = smov 8  }
  0x29   : > { %2505 = dma.hbm_to_vmem [thread:$0]  (!%p2844_p11), %s3152_s1, 36864, %s2837_s25, [#allocation6], %s2761_s14, %s2761_s14, %s2762_s20  }
  0x2a   : > { %s2596_s6 = scalar_lea.hbm %s3153_s2, 128 }
  0x2b   : > { %p2597_p1 = scmp.ne.s32.totalorder %s3153_s2, %s2596_s6  ;;  %p2603_p10 = scmp.lt.u32.totalorder %s2596_s6, %s3153_s2 }
  0x2d   : > { %p2599_p2 = pnand %p2597_p1, %p2860_p13 }
  0x2f   : > { %p2600_p6 = pneg %p2599_p2 }
  0x31   : > { %p2605_p3 = pnand %p2603_p10, %p2600_p6 }
  0x33   : > { %2608 = shalt.err (!%p2605_p3)
}
  0x34   : > { %s2609_s25 = scalar_lea.vmem %s2848_s28, 128  ;;  %p2617_p12 = scmp.lt.s32.totalorder %s2848_s28, %s2848_s28 }
  0x35   : > { %p2610_p5 = scmp.ne.s32.totalorder %s2848_s28, %s2609_s25  ;;  %p2618_p0 = scmp.lt.s32.totalorder %s2609_s25, %s2609_s25 }
  0x37   : > { %p2612_p7 = pnand %p2610_p5, %p2860_p13  ;;  %p2619_p1 = por %p2618_p0, %p2617_p12 }
  0x39   : > { %p2613_p9 = pneg %p2612_p7 }
  0x3b   : > { %p2620_p2 = pnand %p2619_p1, %p2613_p9 }
  0x3d   : > { %2623 = shalt.err (!%p2620_p2)
}
  0x3e   : > { %2508 = dma.hbm_to_vmem [thread:$0]  (!%p2844_p11), %s3153_s2, 128, %s2848_s28, [#allocation6]  }
  0x3f   : > { %s2624_s29 = scalar_lea.hbm %s3154_s3, 2048 }
  0x40   : > { %p2625_p6 = scmp.ne.s32.totalorder %s3154_s3, %s2624_s29  ;;  %p2631_p5 = scmp.lt.u32.totalorder %s2624_s29, %s3154_s3 }
  0x42   : > { %p2627_p10 = pnand %p2625_p6, %p2860_p13 }
  0x44   : > { %p2628_p3 = pneg %p2627_p10 }
  0x46   : > { %p2633_p7 = pnand %p2631_p5, %p2628_p3 }
  0x48   : > { %2636 = shalt.err (!%p2633_p7)
}
  0x49   : > { %s2637_s9 = scalar_lea.vmem %s179_s30, 2048  ;;  %p2645_p1 = scmp.lt.s32.totalorder %s179_s30, %s179_s30 }
  0x4a   : > { %p2638_p9 = scmp.ne.s32.totalorder %s179_s30, %s2637_s9  ;;  %p2646_p2 = scmp.lt.s32.totalorder %s2637_s9, %s2637_s9 }
  0x4c   : > { %p2640_p12 = pnand %p2638_p9, %p2860_p13  ;;  %p2647_p4 = por %p2646_p2, %p2645_p1 }
  0x4e   : > { %p2641_p0 = pneg %p2640_p12 }
  0x50   : > { %p2648_p8 = pnand %p2647_p4, %p2641_p0 }
  0x52   : > { %2651 = shalt.err (!%p2648_p8)
}
  0x53   : > { %2511 = dma.hbm_to_vmem [thread:$0]  (!%p2844_p11), %s3154_s3, 2048, %s179_s30, [#allocation9], %s2761_s14, %s2761_s14, %s2762_s20  }
  0x54   : > { %s2930_s10 = sadd.s32 1, %s2756_s18   ;;  %s29_s25 = sadd.s32 1, %s2752_s17 }
  0x55   : > { %s26_s26 = ssub.s32 %s2756_s18, %s2930_s10  ;;  %p36_p8 = scmp.ne.s32.totalorder %s2752_s17, %s2748_s16 }
  0x56   : > { %p27_p4 = scmp.eq.s32.totalorder %s26_s26, 0  ;;  %p37_p13 = scmp.eq.s32.totalorder %s2756_s18, 0 }
  0x57   : > { %p2523_p6 = scmp.lt.s32.totalorder %s2756_s18, 2  ;;  %p3164_p3 = scmp.eq.s32.totalorder %s2814_s19, 1 }
  0x58   : > { %s2940_s12 = scalar_select %p27_p4, %s2752_s17, %s29_s25  }
  0x59   : > { %p38_p10 = por %p37_p13, %p36_p8  ;;  %p2944_p5 = por %p3164_p3, %p36_p8 }
  0x5a   : > { %s192_s24 = sand.u32 1, %s2752_s17   ;;  %s1619_s27 = sshll.u32 %s2756_s18, 8 }
  0x5b   : > { %s1602_s30 = sshll.u32 %s192_s24, 4  ;;  %s2953_s6 = scalar_lea.hbm %s3151_s0, %s1619_s27 }
  0x5c   : > { %s196_s7 = scalar_lea.vmem [#allocation2], %s1602_s30  ;;  %p2955_p11 = pnand %p2523_p6, %p38_p10 }
  0x5d   : > { %s203_s8 = sshll.u32 %s196_s7, 4  ;;  %s2961_s28 = scalar_lea.sflag [#allocation3], %s192_s24  ;;  %s2959_s8 = int_to_ptr.vmem [resolvable:$true] %s203_s8 }
  0x5e   : > { %s2652_s11 = scalar_lea.hbm %s2953_s6, 256  ;;  %p2654_p9 = pneg %p2955_p11 }
  0x5f   : > { %p2653_p7 = scmp.ne.s32.totalorder %s2953_s6, %s2652_s11  ;;  %s2657_s27 = scalar_lea.hbm %s3151_s0, 512 }
  0x60   : > { %p2658_p1 = scmp.lt.u32.totalorder %s2953_s6, %s3151_s0  ;;  %p2659_p2 = scmp.lt.u32.totalorder %s2657_s27, %s2652_s11 }
  0x61   : > { %p2655_p12 = pnand %p2654_p9, %p2653_p7  ;;  %p2661_p8 = scmp.lt.u32.totalorder %s2652_s11, %s2953_s6 }
  0x62   : > { %p2660_p4 = por %p2659_p2, %p2658_p1 }
  0x63   : > { %p2656_p0 = pneg %p2655_p12 }
  0x64   : > { %p2662_p13 = por %p2661_p8, %p2660_p4 }
  0x66   : > { %p2663_p6 = pnand %p2662_p13, %p2656_p0 }
  0x68   : > { %2666 = shalt.err (!%p2663_p6)
}
  0x69   : > { %s2667_s24 = scalar_lea.vmem %s2959_s8, 256  ;;  %s2763_s5 = smov [#allocation2]  }
  0x6a   : > { %p2668_p10 = scmp.ne.s32.totalorder %s2959_s8, %s2667_s24  ;;  %s2672_s7 = sshll.u32 %s2763_s5, 4  ;;  %s2673_s7 = int_to_ptr.vmem [resolvable:$false] %s2672_s7 }
  0x6b   : > { %s2674_s26 = scalar_lea.vmem %s2673_s7, 512  ;;  %p2675_p12 = scmp.lt.s32.totalorder %s2959_s8, %s2673_s7 }
  0x6c   : > { %p2670_p3 = pnand %p2668_p10, %p2654_p9  ;;  %p2676_p1 = scmp.lt.s32.totalorder %s2674_s26, %s2667_s24 }
  0x6e   : > { %p2671_p7 = pneg %p2670_p3  ;;  %p2677_p2 = por %p2676_p1, %p2675_p12 }
  0x70   : > { %p2678_p4 = pnand %p2677_p2, %p2671_p7 }
  0x72   : > { %2681 = shalt.err (!%p2678_p4)
}
  0x73   : > { %2515 = dma.hbm_to_vmem [thread:$0]  (!%p2955_p11), %s2953_s6, 256, %s2959_s8, %s2961_s28, %s2761_s14, %s2761_s14, %s2762_s20  }
  0x74   : > { %p3167_p9 = scmp.ne.s32.totalorder %s3161_s23, 0 }
  0x75   : > { %s2995_s11 = sand.u32 (!%p3167_p9), 1, %s2748_s16   ;;  %p3168_p0 = scmp.ne.s32.totalorder (!%p3167_p9), %s3159_s21, 0 }
  0x76   : > { %215 = sbr.rel (%p3167_p9) target bundleno = 1370 (0x55a), region = 36  ;;  %s1606_s25 = sshll.u32 (!%p3167_p9), %s2995_s11, 4 }
  0x77   : > { %s218_s27 = scalar_lea.sflag (!%p3167_p9), [#allocation3], %s2995_s11  ;;  %s2999_s30 = scalar_lea.vmem (!%p3167_p9), [#allocation2], %s1606_s25 }
  0x7d   : > { %2727 = dma.done.wait (%p3168_p0), %s218_s27, 256  }
  0x7e   : > { %2729 = vsyncadd (%p3168_p0), %s218_s27, 4294967040  ;;  %p3169_p11 = scmp.eq.s32.totalorder %s2814_s19, 0 }
  0x80   : > { %2731 = dma.done.wait (%p3169_p11), [#allocation6], 36992   ;;  %p3170_p8 = pmov %p3169_p11 }
  0x82   : > { %2733 = vsyncadd (%p3170_p8), [#allocation6], 4294930304  ;;  %p3171_p13 = pmov %p3170_p8 }
  0x83   : > { %p3172_p6 = pmov %p3170_p8 }
  0x84   : > { %2735 = dma.done.wait (%p3171_p13), [#allocation9], 2048  }
  0x85   : > { %2737 = vsyncadd (%p3172_p6), [#allocation9], 4294965248  ;;  %v275_v0 = vld [vmem:[#allocation5 + $0x80] sm:$0xff]  ;;  %v276_v1 = vld [vmem:[#allocation5 + $0x88] sm:$0xff]  ;;  %v2764_v46 = vmov 0.0   ;;  %vm361_vm0 = vcmask 1046528  }
  0x86   : > { %v259_v2 = vld [vmem:[#allocation5] sm:$0xff]  ;;  %v2142_v3 = vpack.c.bf16 %v276_v1, %v275_v0  ;;  %v260_v4 = vld [vmem:[#allocation5 + $0x8] sm:$0xff]  ;;  %v277_v5 = vld [vmem:[#allocation5 + $0x90] sm:$0xff]  ;;  %v3014_v47 = vrot.slane %v2764_v46, 1  ;;  %vm367_vm1 = vcmask 1045504   ;;  %vm375_vm2 = vcmask 1041408  }
  0x87   : > { %v278_v6 = vld [vmem:[#allocation5 + $0x98] sm:$0xff]  ;;  %v2144_v7 = vpack.c.bf16 %v260_v4, %v259_v2  ;;  %v291_v9 = vld [vmem:[#allocation5 + $0x100] sm:$0xff]  ;;  %v292_v10 = vld [vmem:[#allocation5 + $0x108] sm:$0xff]  ;;  %vm942_vm3 = vcmask 1043456   ;;  %vm2766_vm4 = vmmov 0   ;;  %s1616_s21 = sshll.u32 %s2814_s19, 4 }
  0x88   : > { %v2146_v8 = vpack.c.bf16 %v278_v6, %v277_v5  ;;  %v261_v11 = vld [vmem:[#allocation5 + $0x10] sm:$0xff]  ;;  %2143 = vmatprep.subr.bf16.mxu0 %v2142_v3  ;;  %v2174_v12 = vpack.c.bf16 %v292_v10, %v291_v9  ;;  %v262_v13 = vld [vmem:[#allocation5 + $0x18] sm:$0xff]  ;;  %v279_v14 = vld [vmem:[#allocation5 + $0xa0] sm:$0xff]  ;;  %s256_s23 = scalar_lea.vmem [#allocation10], %s2995_s11  ;;  %s3107_s8 = scalar_lea.hbm %s3155_s4, %s1616_s21 }
  0x89   : > { %v280_v15 = vld [vmem:[#allocation5 + $0xa8] sm:$0xff]  ;;  %2145 = vmatpush3.bf16.msra.mxu0 %v2144_v7  ;;  %v2148_v16 = vpack.c.bf16 %v262_v13, %v261_v11  ;;  %v293_v17 = vld [vmem:[#allocation5 + $0x110] sm:$0xff]  ;;  %v294_v18 = vld [vmem:[#allocation5 + $0x118] sm:$0xff]  ;;  %s1501_s14 = sshll.u32 %s256_s23, 4  ;;  %s1489_s9 = scalar_lea.sflag [#allocation4], %s2995_s11  ;;  %s3109_s14 = int_to_ptr.vmem [resolvable:$true] %s1501_s14 }
  0x8a   : > { %2147 = vmatprep.subr.bf16.mxu0 %v2146_v8  ;;  %2175 = vmatprep.subr.bf16.mxu1 %v2174_v12  ;;  %v2150_v19 = vpack.c.bf16 %v280_v15, %v279_v14  ;;  %v2178_v20 = vpack.c.bf16 %v294_v18, %v293_v17  ;;  %v263_v21 = vld [vmem:[#allocation5 + $0x20] sm:$0xff]  ;;  %v264_v22 = vld [vmem:[#allocation5 + $0x28] sm:$0xff]  ;;  %v281_v23 = vld [vmem:[#allocation5 + $0xb0] sm:$0xff]  ;;  %s2682_s28 = scalar_lea.vmem %s3109_s14, 16  ;;  %s2767_s19 = smov [#allocation10]  }
  0x8b   : > { %2177 = vmatpush3.bf16.msra.mxu1 %v2174_v12  ;;  %v282_v24 = vld [vmem:[#allocation5 + $0xb8] sm:$0xff]  ;;  %v295_v25 = vld [vmem:[#allocation5 + $0x120] sm:$0xff]  ;;  %v296_v26 = vld [vmem:[#allocation5 + $0x128] sm:$0xff]  ;;  %v2152_v28 = vpack.c.bf16 %v264_v22, %v263_v21  ;;  %p2683_p10 = scmp.ne.s32.totalorder %s3109_s14, %s2682_s28  ;;  %s2686_s29 = sshll.u32 %s2767_s19, 4  ;;  %s2687_s29 = int_to_ptr.vmem [resolvable:$false] %s2686_s29 }
  0x8c   : > { %2179 = vmatprep.subr.bf16.mxu1 %v2178_v20  ;;  %v2182_v27 = vpack.c.bf16 %v296_v26, %v295_v25  ;;  %v297_v29 = vld [vmem:[#allocation5 + $0x130] sm:$0xff]  ;;  %v298_v30 = vld [vmem:[#allocation5 + $0x138] sm:$0xff]  ;;  %v2154_v31 = vpack.c.bf16 %v282_v24, %v281_v23  ;;  %v283_v34 = vld [vmem:[#allocation5 + $0xc0] sm:$0xff]  ;;  %s2688_s24 = scalar_lea.vmem %s2687_s29, 32  ;;  %p2689_p12 = scmp.lt.s32.totalorder %s3109_s14, %s2687_s29 }
  0x8d   : > { %2149 = vmatpush3.bf16.msra.mxu0 %v2148_v16  ;;  %v265_v32 = vld [vmem:[#allocation5 + $0x30] sm:$0xff]  ;;  %v266_v33 = vld [vmem:[#allocation5 + $0x38] sm:$0xff]  ;;  %v284_v35 = vld [vmem:[#allocation5 + $0xc8] sm:$0xff]  ;;  %v2186_v36 = vpack.c.bf16 %v298_v30, %v297_v29  ;;  %p2684_p3 = pnand %p2683_p10, %p2944_p5  ;;  %p2690_p1 = scmp.lt.s32.totalorder %s2688_s24, %s2682_s28 }
  0x8e   : > { %2151 = vmatprep.subr.bf16.mxu0 %v2150_v19  ;;  %v2156_v37 = vpack.c.bf16 %v266_v33, %v265_v32  ;;  %v299_v38 = vld [vmem:[#allocation5 + $0x140] sm:$0xff]  ;;  %v300_v39 = vld [vmem:[#allocation5 + $0x148] sm:$0xff]  ;;  %v2158_v40 = vpack.c.bf16 %v284_v35, %v283_v34  ;;  %v285_v43 = vld [vmem:[#allocation5 + $0xd0] sm:$0xff] }
  0x8f   : > { %2181 = vmatpush3.bf16.msra.mxu1 %v2178_v20  ;;  %v267_v41 = vld [vmem:[#allocation5 + $0x40] sm:$0xff]  ;;  %v268_v42 = vld [vmem:[#allocation5 + $0x48] sm:$0xff]  ;;  %v286_v44 = vld [vmem:[#allocation5 + $0xd8] sm:$0xff]  ;;  %v2190_v48 = vpack.c.bf16 %v300_v39, %v299_v38  ;;  %p2685_p7 = pneg %p2684_p3  ;;  %p2691_p2 = por %p2690_p1, %p2689_p12 }
  0x90   : > { %2183 = vmatprep.subr.bf16.mxu1 %v2182_v27  ;;  %v301_v45 = vld [vmem:[#allocation5 + $0x150] sm:$0xff]  ;;  %v302_v49 = vld [vmem:[#allocation5 + $0x158] sm:$0xff]  ;;  %v2160_v52 = vpack.c.bf16 %v268_v42, %v267_v41  ;;  %v2162_v55 = vpack.c.bf16 %v286_v44, %v285_v43  ;;  %v287_v60 = vld [vmem:[#allocation5 + $0xe0] sm:$0xff] }
  0x91   : > { %2153 = vmatpush3.bf16.msra.mxu0 %v2152_v28  ;;  %v3017_v50 = vld [vmem:[%s2999_s30] sm:$0xff]  ;;  %v3020_v51 = vld [vmem:[%s2999_s30 + $0x8] sm:$0xff]  ;;  %v2194_v62 = vpack.c.bf16 %v302_v49, %v301_v45  ;;  %p2692_p4 = pnand %p2691_p2, %p2685_p7 }
  0x92   : > { %2155 = vmatprep.subr.bf16.mxu0 %v2154_v31  ;;  %v363_v53 = vrot.slane %v3017_v50, 1  ;;  %v365_v54 = vrot.slane %v3020_v51, 1  ;;  %v269_v56 = vld [vmem:[#allocation5 + $0x50] sm:$0xff]  ;;  %v270_v57 = vld [vmem:[#allocation5 + $0x58] sm:$0xff]  ;;  %v368_v58 = vrot.slane %v3017_v50, 2  ;;  %v369_v59 = vrot.slane %v3020_v51, 2 }
  0x93   : > { %2185 = vmatpush3.bf16.msra.mxu1 %v2182_v27  ;;  %v288_v61 = vld [vmem:[#allocation5 + $0xe8] sm:$0xff]  ;;  %v2164_v5 = vpack.c.bf16 %v270_v57, %v269_v56  ;;  %v303_v6 = vld [vmem:[#allocation5 + $0x160] sm:$0xff]  ;;  %v289_v13 = vld [vmem:[#allocation5 + $0xf0] sm:$0xff]  ;;  %v3039_v27 = vrot.slane %v2764_v46, 6  ;;  %v377_v28 = vrot.slane %v3017_v50, 6 }
  0x94   : > { %2187 = vmatprep.subr.bf16.mxu1 %v2186_v36  ;;  %v364_v63 = vsel %vm361_vm0, %v3014_v47, %v363_v53  ;;  %v3029_v0 = vsel %vm361_vm0, %v363_v53, %v365_v54  ;;  %v3033_v3 = vsel %vm367_vm1, %v368_v58, %v369_v59  ;;  %v382_v4 = vrot.slane %v368_v58, 6  ;;  %v304_v7 = vld [vmem:[#allocation5 + $0x168] sm:$0xff]  ;;  %v271_v10 = vld [vmem:[#allocation5 + $0x60] sm:$0xff]  ;;  %v290_v14 = vld [vmem:[#allocation5 + $0xf8] sm:$0xff] }
  0x95   : > { %2157 = vmatpush3.bf16.msra.mxu0 %v2156_v37  ;;  %v379_v1 = vrot.slane %v364_v63, 6  ;;  %v380_v2 = vrot.slane %v3029_v0, 6  ;;  %v383_v8 = vrot.slane %v3033_v3, 6  ;;  %v2166_v9 = vpack.c.bf16 %v288_v61, %v287_v60  ;;  %v272_v11 = vld [vmem:[#allocation5 + $0x68] sm:$0xff]  ;;  %v305_v18 = vld [vmem:[#allocation5 + $0x170] sm:$0xff]  ;;  %v306_v19 = vld [vmem:[#allocation5 + $0x178] sm:$0xff] }
  0x96   : > { %2159 = vmatprep.subr.bf16.mxu0 %v2158_v40  ;;  %v2198_v16 = vpack.c.bf16 %v304_v7, %v303_v6  ;;  %v2168_v17 = vpack.c.bf16 %v272_v11, %v271_v10  ;;  %v2170_v20 = vpack.c.bf16 %v290_v14, %v289_v13  ;;  %v273_v21 = vld [vmem:[#allocation5 + $0x70] sm:$0xff]  ;;  %v274_v22 = vld [vmem:[#allocation5 + $0x78] sm:$0xff]  ;;  %v324_v23 = vld [vmem:[#allocation5 + $0x200] sm:$0xff]  ;;  %v2202_v25 = vpack.c.bf16 %v306_v19, %v305_v18 }
  0x97   : > { %2189 = vmatpush3.bf16.msra.mxu1 %v2186_v36  ;;  %v381_v12 = vsel %vm375_vm2, %v379_v1, %v380_v2  ;;  %v384_v15 = vsel %vm375_vm2, %v382_v4, %v383_v8  ;;  %v325_v24 = vld [vmem:[#allocation5 + $0x208] sm:$0xff]  ;;  %v2172_v26 = vpack.c.bf16 %v274_v22, %v273_v21  ;;  %v340_v29 = vld [vmem:[#allocation5 + $0x280] sm:$0xff]  ;;  %v387_v31 = vrot.slane %v365_v54, 6  ;;  %v326_v36 = vld [vmem:[#allocation5 + $0x210] sm:$0xff] }
  0x98   : > { %2191 = vmatprep.subr.bf16.mxu1 %v2190_v48  ;;  %461 = vmatprep.mubr.f32.mxu0 %v381_v12  ;;  %v341_v30 = vld [vmem:[#allocation5 + $0x288] sm:$0xff]  ;;  %v2206_v32 = vpack.c.bf16 %v325_v24, %v324_v23  ;;  %v308_v33 = vld [vmem:[#allocation5 + $0x180] sm:$0xff]  ;;  %v389_v35 = vrot.slane %v369_v59, 6  ;;  %v327_v37 = vld [vmem:[#allocation5 + $0x218] sm:$0xff]  ;;  %v378_v39 = vsel %vm375_vm2, %v3039_v27, %v377_v28  ;;  %v385_v40 = vrot.slane %v3020_v51, 6 }
  0x99   : > { %2161 = vmatpush3.bf16.msra.mxu0 %v2160_v52  ;;  %1929 = vmatprep.mubr.f32.mxu1 %v384_v15  ;;  %v309_v34 = vld [vmem:[#allocation5 + $0x188] sm:$0xff]  ;;  %v2238_v38 = vpack.c.bf16 %v341_v30, %v340_v29  ;;  %v342_v42 = vld [vmem:[#allocation5 + $0x290] sm:$0xff]  ;;  %v343_v43 = vld [vmem:[#allocation5 + $0x298] sm:$0xff]  ;;  %v388_v44 = vsel %vm375_vm2, %v380_v2, %v387_v31  ;;  %v2210_v45 = vpack.c.bf16 %v327_v37, %v326_v36 }
  0x9a   : > { %2163 = vmatprep.subr.bf16.mxu0 %v2162_v55  ;;  %v2208_v41 = vpack.c.bf16 %v309_v34, %v308_v33  ;;  %v311_v49 = vld [vmem:[#allocation5 + $0x198] sm:$0xff]  ;;  %v390_v52 = vsel %vm375_vm2, %v383_v8, %v389_v35  ;;  %v328_v53 = vld [vmem:[#allocation5 + $0x220] sm:$0xff]  ;;  %v329_v54 = vld [vmem:[#allocation5 + $0x228] sm:$0xff]  ;;  %v2242_v55 = vpack.c.bf16 %v343_v43, %v342_v42  ;;  %v386_v56 = vsel %vm375_vm2, %v377_v28, %v385_v40 }
  0x9b   : > { %2193 = vmatpush3.bf16.msra.mxu1 %v2190_v48  ;;  %v310_v48 = vld [vmem:[#allocation5 + $0x190] sm:$0xff]  ;;  %v344_v58 = vld [vmem:[#allocation5 + $0x2a0] sm:$0xff]  ;;  %v345_v59 = vld [vmem:[#allocation5 + $0x2a8] sm:$0xff]  ;;  %v2214_v60 = vpack.c.bf16 %v329_v54, %v328_v53 }
  0x9c   : > { %2195 = vmatprep.subr.bf16.mxu1 %v2194_v62  ;;  %v2212_v57 = vpack.c.bf16 %v311_v49, %v310_v48  ;;  %v312_v61 = vld [vmem:[#allocation5 + $0x1a0] sm:$0xff]  ;;  %v2246_v63 = vpack.c.bf16 %v345_v59, %v344_v58  ;;  %v330_v1 = vld [vmem:[#allocation5 + $0x230] sm:$0xff]  ;;  %v331_v2 = vld [vmem:[#allocation5 + $0x238] sm:$0xff] }
  0x9d   : > { %2165 = vmatpush3.bf16.msra.mxu0 %v2164_v5  ;;  %v2218_v3 = vpack.c.bf16 %v331_v2, %v330_v1  ;;  %v314_v4 = vld [vmem:[#allocation5 + $0x1b0] sm:$0xff]  ;;  %v315_v5 = vld [vmem:[#allocation5 + $0x1b8] sm:$0xff]  ;;  %v332_v10 = vld [vmem:[#allocation5 + $0x240] sm:$0xff] }
  0x9e   : > { %2167 = vmatprep.subr.bf16.mxu0 %v2166_v9  ;;  %v346_v6 = vld [vmem:[#allocation5 + $0x2b0] sm:$0xff]  ;;  %v2220_v7 = vpack.c.bf16 %v315_v5, %v314_v4  ;;  %v347_v8 = vld [vmem:[#allocation5 + $0x2b8] sm:$0xff]  ;;  %v333_v11 = vld [vmem:[#allocation5 + $0x248] sm:$0xff] }
  0x9f   : > { %2197 = vmatpush3.bf16.msra.mxu1 %v2194_v62  ;;  %v313_v62 = vld [vmem:[#allocation5 + $0x1a8] sm:$0xff]  ;;  %v2250_v9 = vpack.c.bf16 %v347_v8, %v346_v6  ;;  %v2222_v12 = vpack.c.bf16 %v333_v11, %v332_v10  ;;  %v316_v13 = vld [vmem:[#allocation5 + $0x1c0] sm:$0xff]  ;;  %v334_v19 = vld [vmem:[#allocation5 + $0x250] sm:$0xff] }
  0xa0   : > { %2199 = vmatprep.subr.bf16.mxu1 %v2198_v16  ;;  %v2216_v0 = vpack.c.bf16 %v313_v62, %v312_v61  ;;  %v317_v14 = vld [vmem:[#allocation5 + $0x1c8] sm:$0xff]  ;;  %v348_v15 = vld [vmem:[#allocation5 + $0x2c0] sm:$0xff]  ;;  %v318_v22 = vld [vmem:[#allocation5 + $0x1d0] sm:$0xff] }
  0xa1   : > { %2169 = vmatpush3.bf16.msra.mxu0 %v2168_v17  ;;  %v349_v17 = vld [vmem:[#allocation5 + $0x2c8] sm:$0xff]  ;;  %v319_v23 = vld [vmem:[#allocation5 + $0x1d8] sm:$0xff]  ;;  %v350_v24 = vld [vmem:[#allocation5 + $0x2d0] sm:$0xff] }
  0xa2   : > { %2171 = vmatprep.subr.bf16.mxu0 %v2170_v20  ;;  %v2254_v18 = vpack.c.bf16 %v349_v17, %v348_v15  ;;  %v335_v20 = vld [vmem:[#allocation5 + $0x258] sm:$0xff]  ;;  %v336_v29 = vld [vmem:[#allocation5 + $0x260] sm:$0xff]  ;;  %v337_v30 = vld [vmem:[#allocation5 + $0x268] sm:$0xff] }
  0xa3   : > { %2201 = vmatpush3.bf16.msra.mxu1 %v2198_v16  ;;  %v2224_v16 = vpack.c.bf16 %v317_v14, %v316_v13  ;;  %v2226_v21 = vpack.c.bf16 %v335_v20, %v334_v19  ;;  %v2230_v31 = vpack.c.bf16 %v337_v30, %v336_v29  ;;  %v321_v33 = vld [vmem:[#allocation5 + $0x1e8] sm:$0xff]  ;;  %v352_v34 = vld [vmem:[#allocation5 + $0x2e0] sm:$0xff]  ;;  %v323_v42 = vld [vmem:[#allocation5 + $0x1f8] sm:$0xff] }
  0xa4   : > { %2203 = vmatprep.subr.bf16.mxu1 %v2202_v25  ;;  %v353_v36 = vld [vmem:[#allocation5 + $0x2e8] sm:$0xff]  ;;  %v354_v43 = vld [vmem:[#allocation5 + $0x2f0] sm:$0xff]  ;;  %v735_v49 = vld [vmem:[#allocation5 + $0x300] sm:$0xff] }
  0xa5   : > { %2173 = vmatpush3.bf16.msra.mxu0 %v2172_v26  ;;  %v351_v26 = vld [vmem:[#allocation5 + $0x2d8] sm:$0xff]  ;;  %v2262_v37 = vpack.c.bf16 %v353_v36, %v352_v34  ;;  %v737_v13 = vld [vmem:[#allocation5 + $0x310] sm:$0xff]  ;;  %v739_v29 = vld [vmem:[#allocation5 + $0x320] sm:$0xff] }
  0xa6   : > { %2207 = vmatprep.subr.bf16.mxu0 %v2206_v32  ;;  %v2258_v28 = vpack.c.bf16 %v351_v26, %v350_v24  ;;  %v320_v32 = vld [vmem:[#allocation5 + $0x1e0] sm:$0xff]  ;;  %v738_v14 = vld [vmem:[#allocation5 + $0x318] sm:$0xff]  ;;  %v740_v30 = vld [vmem:[#allocation5 + $0x328] sm:$0xff] }
  0xa7   : > { %2205 = vmatpush3.bf16.msra.mxu1 %v2202_v25  ;;  %v2228_v25 = vpack.c.bf16 %v319_v23, %v318_v22  ;;  %v2232_v35 = vpack.c.bf16 %v321_v33, %v320_v32  ;;  %v2274_v23 = vpack.c.bf16 %v738_v14, %v737_v13  ;;  %v741_v32 = vld [vmem:[#allocation5 + $0x330] sm:$0xff]  ;;  %v742_v33 = vld [vmem:[#allocation5 + $0x338] sm:$0xff]  ;;  %v744_v36 = vld [vmem:[#allocation5 + $0x348] sm:$0xff] }
  0xa8   : > { %462 = vmatmul.mubr.f32.vlgmr.msra.gmra.mrb[0].mxu0 %v378_v39  ;;  %2239 = vmatprep.subr.bf16.mxu1 %v2238_v38  ;;  %v339_v39 = vld [vmem:[#allocation5 + $0x278] sm:$0xff]  ;;  %v2282_v34 = vpack.c.bf16 %v742_v33, %v741_v32  ;;  %v878_v32 = vld [vmem:[#allocation5 + $0x5d0] sm:$0xff] }
  0xa9   : > { %466 = vmatprep.mubr.f32.mxu0 %v388_v44  ;;  %2209 = vmatpush3.bf16.msra.mxu0 %v2208_v41  ;;  %v322_v41 = vld [vmem:[#allocation5 + $0x1f0] sm:$0xff]  ;;  %v875_v13 = vld [vmem:[#allocation5 + $0x5b8] sm:$0xff] }
  0xaa   : > { %1930 = vmatmul.mubr.f32.vlgmr.msra.gmra.mrb[0].mxu1 %v390_v52  ;;  %2211 = vmatprep.subr.bf16.mxu0 %v2210_v45  ;;  %v2236_v44 = vpack.c.bf16 %v323_v42, %v322_v41  ;;  %v355_v45 = vld [vmem:[#allocation5 + $0x2f8] sm:$0xff]  ;;  %v736_v52 = vld [vmem:[#allocation5 + $0x308] sm:$0xff] }
  0xab   : > { %2241 = vmatpush3.bf16.msra.mxu1 %v2238_v38  ;;  %v338_v38 = vld [vmem:[#allocation5 + $0x270] sm:$0xff]  ;;  %v2266_v48 = vpack.c.bf16 %v355_v45, %v354_v43  ;;  %v2270_v53 = vpack.c.bf16 %v736_v52, %v735_v49  ;;  %v748_v41 = vld [vmem:[#allocation5 + $0x368] sm:$0xff]  ;;  %v852_v45 = vld [vmem:[#allocation5 + $0x500] sm:$0xff] }
  0xac   : > { %467 = vmatmul.mubr.f32.gmra.mrb[2].mxu0 %v386_v56  ;;  %2243 = vmatprep.subr.bf16.mxu1 %v2242_v55  ;;  %v2234_v40 = vpack.c.bf16 %v339_v39, %v338_v38  ;;  %v1610_v56 = vld [vmem:[#allocation7] ss:$0 sm:$0xff]  ;;  %v746_v38 = vld [vmem:[#allocation5 + $0x358] sm:$0xff]  ;;  %v749_v43 = vld [vmem:[#allocation5 + $0x370] sm:$0xff] }
  0xad   : > { %2213 = vmatpush3.bf16.msra.mxu0 %v2212_v57  ;;  %v868_v49 = vld [vmem:[#allocation5 + $0x580] sm:$0xff]  ;;  %v879_v33 = vld [vmem:[#allocation5 + $0x5d8] sm:$0xff] }
  0xae   : > { %2215 = vmatprep.subr.bf16.mxu0 %v2214_v60 }
  0xaf   : > { %2245 = vmatpush3.bf16.msra.mxu1 %v2242_v55 }
  0xb0   : > { %2247 = vmatprep.subr.bf16.mxu1 %v2246_v63 }
  0xb1   : > { %2217 = vmatpush3.bf16.msra.mxu0 %v2216_v0 }
  0xb2   : > { %2219 = vmatprep.subr.bf16.mxu0 %v2218_v3 }
  0xb3   : > { %2249 = vmatpush3.bf16.msra.mxu1 %v2246_v63 }
  0xb4   : > { %2251 = vmatprep.subr.bf16.mxu1 %v2250_v9 }
  0xb5   : > { %2221 = vmatpush3.bf16.msra.mxu0 %v2220_v7 }
  0xb6   : > { %2223 = vmatprep.subr.bf16.mxu0 %v2222_v12 }
  0xb7   : > { %2253 = vmatpush3.bf16.msra.mxu1 %v2250_v9 }
  0xb8   : > { %2255 = vmatprep.subr.bf16.mxu1 %v2254_v18 }
  0xb9   : > { %2225 = vmatpush3.bf16.msra.mxu0 %v2224_v16 }
  0xba   : > { %2227 = vmatprep.subr.bf16.mxu0 %v2226_v21 }
  0xbb   : > { %2257 = vmatpush3.bf16.msra.mxu1 %v2254_v18 }
  0xbc   : > { %2259 = vmatprep.subr.bf16.mxu1 %v2258_v28 }
  0xbd   : > { %2229 = vmatpush3.bf16.msra.mxu0 %v2228_v25 }
  0xbe   : > { %2231 = vmatprep.subr.bf16.mxu0 %v2230_v31  ;;  %v2278_v31 = vpack.c.bf16 %v740_v30, %v739_v29  ;;  %v862_v29 = vld [vmem:[#allocation5 + $0x550] sm:$0xff]  ;;  %v863_v30 = vld [vmem:[#allocation5 + $0x558] sm:$0xff] }
  0xbf   : > { %2261 = vmatpush3.bf16.msra.mxu1 %v2258_v28 }
  0xc0   : > { %2263 = vmatprep.subr.bf16.mxu1 %v2262_v37 }
  0xc1   : > { %2233 = vmatpush3.bf16.msra.mxu0 %v2232_v35  ;;  %v743_v35 = vld [vmem:[#allocation5 + $0x340] sm:$0xff] }
  0xc2   : > { %2235 = vmatprep.subr.bf16.mxu0 %v2234_v40  ;;  %v747_v40 = vld [vmem:[#allocation5 + $0x360] sm:$0xff] }
  0xc3   : > { %2265 = vmatpush3.bf16.msra.mxu1 %v2262_v37  ;;  %v745_v37 = vld [vmem:[#allocation5 + $0x350] sm:$0xff]  ;;  %v2294_v42 = vpack.c.bf16 %v748_v41, %v747_v40  ;;  %v881_v41 = vld [vmem:[#allocation5 + $0x5e8] sm:$0xff] }
  0xc4   : > { %2267 = vmatprep.subr.bf16.mxu1 %v2266_v48  ;;  %v2290_v39 = vpack.c.bf16 %v746_v38, %v745_v37  ;;  %v864_v37 = vld [vmem:[#allocation5 + $0x560] sm:$0xff]  ;;  %v865_v38 = vld [vmem:[#allocation5 + $0x568] sm:$0xff] }
  0xc5   : > { %2237 = vmatpush3.bf16.msra.mxu0 %v2236_v44  ;;  %v750_v44 = vld [vmem:[#allocation5 + $0x378] sm:$0xff]  ;;  %v2326_v40 = vpack.c.bf16 %v865_v38, %v864_v37 }
  0xc6   : > { %2271 = vmatprep.subr.bf16.mxu0 %v2270_v53 }
  0xc7   : > { %2269 = vmatpush3.bf16.msra.mxu1 %v2266_v48  ;;  %v853_v48 = vld [vmem:[#allocation5 + $0x508] sm:$0xff] }
  0xc8   : > { %v2302_v52 = vpack.c.bf16 %v853_v48, %v852_v45  ;;  %v866_v45 = vld [vmem:[#allocation5 + $0x570] sm:$0xff]  ;;  %v867_v48 = vld [vmem:[#allocation5 + $0x578] sm:$0xff] }
  0xca   : > { %2303 = vmatprep.subr.bf16.mxu1 %v2302_v52  ;;  %v2330_v52 = vpack.c.bf16 %v867_v48, %v866_v45 }
 0x17b   : > { %v1652_v54 = vpop.f32.mrb[0].mxu0 }
 0x17c   : > { %v1653_v55 = vpop.f32.mrb[1].mxu0 }
 0x17d   : > { %v1654_v57 = vadd.f32 %v1653_v55, %v1652_v54  ;;  %v1931_v58 = vpop.f32.mrb[0].mxu1  ;;  %v836_v54 = vld [vmem:[#allocation5 + $0x480] sm:$0xff]  ;;  %v837_v55 = vld [vmem:[#allocation5 + $0x488] sm:$0xff] }
 0x17e   : > { %v538_v59 = vpop.f32.mrb[1].mxu1 }
 0x17f   : > { %v1655_v60 = vpop.f32.mrb[2].mxu0  ;;  %v464_v61 = vadd.f32 %v1654_v57, %v1610_v56  ;;  %v2304_v57 = vpack.c.bf16 %v837_v55, %v836_v54  ;;  %v850_v54 = vld [vmem:[#allocation5 + $0x4f0] sm:$0xff]  ;;  %v851_v55 = vld [vmem:[#allocation5 + $0x4f8] sm:$0xff] }
 0x180   : > { %v1656_v62 = vpop.f32.mrb[3].mxu0 }
 0x181   : > { %v1657_v63 = vadd.f32 %v1656_v62, %v1655_v60  ;;  %v539_v0 = vadd.f32 %v538_v59, %v464_v61  ;;  %v855_v59 = vld [vmem:[#allocation5 + $0x518] sm:$0xff]  ;;  %v870_v60 = vld [vmem:[#allocation5 + $0x590] sm:$0xff] }
 0x182   : > { %v871_v62 = vld [vmem:[#allocation5 + $0x598] sm:$0xff] }
 0x183   : > { %v469_v1 = vadd.f32 %v1657_v63, %v1610_v56  ;;  %v547_v2 = vmax.f32 %v539_v0, 0.0  ;;  %v838_v63 = vld [vmem:[#allocation5 + $0x490] sm:$0xff]  ;;  %v839_v0 = vld [vmem:[#allocation5 + $0x498] sm:$0xff] }
 0x185   : > { %v544_v3 = vadd.f32 %v1931_v58, %v469_v1  ;;  %v551_v4 = vrot.slane %v547_v2, 1  ;;  %v555_v5 = vrot.slane %v547_v2, 2  ;;  %v562_v11 = vrot.slane %v547_v2, 6  ;;  %v854_v58 = vld [vmem:[#allocation5 + $0x510] sm:$0xff]  ;;  %v856_v2 = vld [vmem:[#allocation5 + $0x520] sm:$0xff] }
 0x186   : > { %v2306_v61 = vpack.c.bf16 %v855_v59, %v854_v58  ;;  %v2308_v1 = vpack.c.bf16 %v839_v0, %v838_v63  ;;  %v901_v58 = vld [vmem:[#allocation5 + $0x680] sm:$0xff]  ;;  %v902_v59 = vld [vmem:[#allocation5 + $0x688] sm:$0xff] }
 0x187   : > { %v548_v6 = vmax.f32 %v544_v3, 0.0  ;;  %v552_v9 = vsel %vm361_vm0, %v3014_v47, %v551_v4  ;;  %v567_v12 = vrot.slane %v555_v5, 6  ;;  %v563_v28 = vsel %vm375_vm2, %v3039_v27, %v562_v11  ;;  %v857_v3 = vld [vmem:[#allocation5 + $0x528] sm:$0xff] }
 0x188   : > { %v564_v19 = vrot.slane %v552_v9, 6  ;;  %v2286_v27 = vpack.c.bf16 %v744_v36, %v743_v35  ;;  %v2354_v35 = vpack.c.bf16 %v879_v33, %v878_v32  ;;  %v847_v36 = vld [vmem:[#allocation5 + $0x4d8] sm:$0xff] }
 0x189   : > { %v553_v7 = vrot.slane %v548_v6, 1  ;;  %v556_v8 = vrot.slane %v548_v6, 2  ;;  %v570_v10 = vrot.slane %v548_v6, 6  ;;  %v873_v6 = vld [vmem:[#allocation5 + $0x5a8] sm:$0xff]  ;;  %v904_v32 = vld [vmem:[#allocation5 + $0x698] sm:$0xff] }
 0x18b   : > { %v554_v15 = vsel %vm361_vm0, %v551_v4, %v553_v7  ;;  %v557_v16 = vsel %vm367_vm1, %v555_v5, %v556_v8  ;;  %v574_v17 = vrot.slane %v556_v8, 6  ;;  %v572_v18 = vrot.slane %v553_v7, 6  ;;  %v872_v4 = vld [vmem:[#allocation5 + $0x5a0] sm:$0xff]  ;;  %v841_v8 = vld [vmem:[#allocation5 + $0x4a8] sm:$0xff] }
 0x18c   : > { %v565_v20 = vrot.slane %v554_v15, 6  ;;  %v568_v21 = vrot.slane %v557_v16, 6  ;;  %v571_v22 = vsel %vm375_vm2, %v562_v11, %v570_v10  ;;  %v2310_v5 = vpack.c.bf16 %v857_v3, %v856_v2  ;;  %v840_v7 = vld [vmem:[#allocation5 + $0x4a0] sm:$0xff]  ;;  %v858_v10 = vld [vmem:[#allocation5 + $0x530] sm:$0xff]  ;;  %v859_v11 = vld [vmem:[#allocation5 + $0x538] sm:$0xff] }
 0x18d   : > { %v2342_v9 = vpack.c.bf16 %v873_v6, %v872_v4  ;;  %v2312_v14 = vpack.c.bf16 %v841_v8, %v840_v7  ;;  %v2314_v15 = vpack.c.bf16 %v859_v11, %v858_v10  ;;  %v842_v16 = vld [vmem:[#allocation5 + $0x4b0] sm:$0xff]  ;;  %v1611_v2 = vld [vmem:[#allocation7 + $0x1] ss:$0 sm:$0xff] }
 0x18e   : > { %v566_v24 = vsel %vm375_vm2, %v564_v19, %v565_v20  ;;  %v569_v47 = vsel %vm375_vm2, %v567_v12, %v568_v21  ;;  %v575_v25 = vsel %vm375_vm2, %v568_v21, %v574_v17  ;;  %v573_v26 = vsel %vm375_vm2, %v565_v20, %v572_v18  ;;  %v874_v12 = vld [vmem:[#allocation5 + $0x5b0] sm:$0xff]  ;;  %v843_v17 = vld [vmem:[#allocation5 + $0x4b8] sm:$0xff]  ;;  %v860_v19 = vld [vmem:[#allocation5 + $0x540] sm:$0xff] }
 0x18f   : > { %646 = vmatprep.mubr.f32.mxu0 %v566_v24  ;;  %1964 = vmatprep.mubr.f32.mxu1 %v569_v47  ;;  %v2346_v18 = vpack.c.bf16 %v875_v13, %v874_v12  ;;  %v861_v20 = vld [vmem:[#allocation5 + $0x548] sm:$0xff]  ;;  %v876_v21 = vld [vmem:[#allocation5 + $0x5c0] sm:$0xff] }
 0x190   : > { %647 = vmatmul.mubr.f32.vlgmr.msra.gmra.mrb[4].mxu0 %v563_v28  ;;  %1965 = vmatmul.mubr.f32.vlgmr.msra.gmra.mrb[2].mxu1 %v575_v25  ;;  %v2318_v24 = vpack.c.bf16 %v861_v20, %v860_v19  ;;  %v844_v25 = vld [vmem:[#allocation5 + $0x4c0] sm:$0xff] }
 0x191   : > { %2273 = vmatpush3.bf16.msra.mxu0 %v2270_v53  ;;  %651 = vmatprep.mubr.f32.mxu0 %v573_v26  ;;  %v869_v53 = vld [vmem:[#allocation5 + $0x588] sm:$0xff]  ;;  %v1612_v12 = vld [vmem:[#allocation7 + $0x2] ss:$0 sm:$0xff] }
 0x192   : > { %2275 = vmatprep.subr.bf16.mxu0 %v2274_v23  ;;  %v2334_v56 = vpack.c.bf16 %v869_v53, %v868_v49  ;;  %2305 = vmatpush3.bf16.msra.mxu1 %v2304_v57  ;;  %v845_v26 = vld [vmem:[#allocation5 + $0x4c8] sm:$0xff]  ;;  %v882_v49 = vld [vmem:[#allocation5 + $0x5f0] sm:$0xff]  ;;  %v883_v53 = vld [vmem:[#allocation5 + $0x5f8] sm:$0xff]  ;;  %v2332_v57 = vpack.c.bf16 %v851_v55, %v850_v54 }
 0x193   : > { %2307 = vmatprep.subr.bf16.mxu1 %v2306_v61  ;;  %v2320_v28 = vpack.c.bf16 %v845_v26, %v844_v25  ;;  %v917_v61 = vld [vmem:[#allocation5 + $0x700] sm:$0xff] }
 0x194   : > { %652 = vmatmul.mubr.f32.gmra.mrb[6].mxu0 %v571_v22  ;;  %v877_v22 = vld [vmem:[#allocation5 + $0x5c8] sm:$0xff]  ;;  %v905_v55 = vld [vmem:[#allocation5 + $0x6a0] sm:$0xff] }
 0x195   : > { %2277 = vmatpush3.bf16.msra.mxu0 %v2274_v23  ;;  %1999 = vmatprep.mubr.f32.mxu0 %v3017_v50  ;;  %v2298_v50 = vpack.c.bf16 %v750_v44, %v749_v43  ;;  %v2316_v23 = vpack.c.bf16 %v843_v17, %v842_v16  ;;  %v2350_v47 = vpack.c.bf16 %v877_v22, %v876_v21  ;;  %v849_v43 = vld [vmem:[#allocation5 + $0x4e8] sm:$0xff] }
 0x196   : > { %2279 = vmatprep.subr.bf16.mxu0 %v2278_v31  ;;  %2309 = vmatpush3.bf16.msra.mxu1 %v2308_v1 }
 0x197   : > { %2311 = vmatprep.subr.bf16.mxu1 %v2310_v5 }
 0x199   : > { %2281 = vmatpush3.bf16.msra.mxu0 %v2278_v31  ;;  %v2322_v31 = vpack.c.bf16 %v863_v30, %v862_v29  ;;  %v3076_v29 = vrot.slane %v2764_v46, 4  ;;  %v886_v30 = vld [vmem:[#allocation5 + $0x608] sm:$0xff] }
 0x19a   : > { %2283 = vmatprep.subr.bf16.mxu0 %v2282_v34  ;;  %2313 = vmatpush3.bf16.msra.mxu1 %v2312_v14 }
 0x19b   : > { %2315 = vmatprep.subr.bf16.mxu1 %v2314_v15 }
 0x19d   : > { %2285 = vmatpush3.bf16.msra.mxu0 %v2282_v34  ;;  %v846_v34 = vld [vmem:[#allocation5 + $0x4d0] sm:$0xff] }
 0x19e   : > { %2287 = vmatprep.subr.bf16.mxu0 %v2286_v27  ;;  %2317 = vmatpush3.bf16.msra.mxu1 %v2316_v23  ;;  %v3069_v23 = vrot.slane %v2764_v46, 2 }
 0x19f   : > { %2319 = vmatprep.subr.bf16.mxu1 %v2318_v24 }
 0x1a1   : > { %2289 = vmatpush3.bf16.msra.mxu0 %v2286_v27  ;;  %v2324_v27 = vpack.c.bf16 %v847_v36, %v846_v34 }
 0x1a2   : > { %2291 = vmatprep.subr.bf16.mxu0 %v2290_v39  ;;  %2321 = vmatpush3.bf16.msra.mxu1 %v2320_v28  ;;  %v885_v28 = vld [vmem:[#allocation5 + $0x600] sm:$0xff] }
 0x1a3   : > { %2323 = vmatprep.subr.bf16.mxu1 %v2322_v31  ;;  %v903_v31 = vld [vmem:[#allocation5 + $0x690] sm:$0xff] }
 0x1a5   : > { %2293 = vmatpush3.bf16.msra.mxu0 %v2290_v39  ;;  %v880_v39 = vld [vmem:[#allocation5 + $0x5e0] sm:$0xff] }
 0x1a6   : > { %2295 = vmatprep.subr.bf16.mxu0 %v2294_v42  ;;  %2325 = vmatpush3.bf16.msra.mxu1 %v2324_v27  ;;  %v2358_v44 = vpack.c.bf16 %v881_v41, %v880_v39  ;;  %v920_v41 = vld [vmem:[#allocation5 + $0x718] sm:$0xff] }
 0x1a7   : > { %2327 = vmatprep.subr.bf16.mxu1 %v2326_v40  ;;  %v919_v40 = vld [vmem:[#allocation5 + $0x710] sm:$0xff] }
 0x1a8   : > { %v2402_v54 = vpack.c.bf16 %v920_v41, %v919_v40  ;;  %v915_v40 = vld [vmem:[#allocation5 + $0x6f0] sm:$0xff]  ;;  %v916_v41 = vld [vmem:[#allocation5 + $0x6f8] sm:$0xff] }
 0x1a9   : > { %2297 = vmatpush3.bf16.msra.mxu0 %v2294_v42  ;;  %v848_v42 = vld [vmem:[#allocation5 + $0x4e0] sm:$0xff] }
 0x1aa   : > { %2299 = vmatprep.subr.bf16.mxu0 %v2298_v50 }
 0x1ad   : > { %2301 = vmatpush3.bf16.msra.mxu0 %v2298_v50  ;;  %v2328_v50 = vpack.c.bf16 %v849_v43, %v848_v42  ;;  %v2368_v42 = vpack.c.bf16 %v886_v30, %v885_v28  ;;  %v2370_v43 = vpack.c.bf16 %v904_v32, %v903_v31  ;;  %v928_v30 = vld [vmem:[#allocation5 + $0x758] sm:$0xff]  ;;  %v913_v32 = vld [vmem:[#allocation5 + $0x6e0] sm:$0xff] }
 0x1ae   : > { %2335 = vmatprep.subr.bf16.mxu0 %v2334_v56 }
 0x1af   : > { %2329 = vmatpush3.bf16.msra.mxu1 %v2328_v50 }
 0x1b0   : > { %2000 = vmatmul.mubr.f32.vlgmr.msra.gmra.mrb[8].mxu0 %v3020_v51  ;;  %v2338_v51 = vpack.c.bf16 %v871_v62, %v870_v60  ;;  %2331 = vmatprep.subr.bf16.mxu1 %v2330_v52  ;;  %v2366_v60 = vpack.c.bf16 %v902_v59, %v901_v58  ;;  %v918_v62 = vld [vmem:[#allocation5 + $0x708] sm:$0xff]  ;;  %v888_v52 = vld [vmem:[#allocation5 + $0x618] sm:$0xff]  ;;  %v921_v58 = vld [vmem:[#allocation5 + $0x720] sm:$0xff] }
 0x1b1   : > { %2337 = vmatpush3.bf16.msra.mxu0 %v2334_v56  ;;  %v2362_v56 = vpack.c.bf16 %v883_v53, %v882_v49  ;;  %v3061_v63 = vpack.c.bf16 %v918_v62, %v917_v61  ;;  %v887_v49 = vld [vmem:[#allocation5 + $0x610] sm:$0xff]  ;;  %v922_v59 = vld [vmem:[#allocation5 + $0x728] sm:$0xff]  ;;  %v889_v62 = vld [vmem:[#allocation5 + $0x620] sm:$0xff] }
 0x1b2   : > { %2339 = vmatprep.subr.bf16.mxu0 %v2338_v51 }
 0x1b3   : > { %2333 = vmatpush3.bf16.msra.mxu1 %v2332_v57 }
 0x1b4   : > { %2367 = vmatprep.subr.bf16.mxu1 %v2366_v60  ;;  %v2372_v60 = vpack.c.bf16 %v888_v52, %v887_v49  ;;  %v1300_v52 = vld [vmem:[#allocation5 + $0x780] sm:$0xff] }
 0x1b5   : > { %2341 = vmatpush3.bf16.msra.mxu0 %v2338_v51 }
 0x1b6   : > { %2343 = vmatprep.subr.bf16.mxu0 %v2342_v9 }
 0x1b9   : > { %2345 = vmatpush3.bf16.msra.mxu0 %v2342_v9 }
 0x1ba   : > { %2347 = vmatprep.subr.bf16.mxu0 %v2346_v18 }
 0x1bd   : > { %2349 = vmatpush3.bf16.msra.mxu0 %v2346_v18 }
 0x1be   : > { %2351 = vmatprep.subr.bf16.mxu0 %v2350_v47 }
 0x1c1   : > { %2353 = vmatpush3.bf16.msra.mxu0 %v2350_v47 }
 0x1c2   : > { %2355 = vmatprep.subr.bf16.mxu0 %v2354_v35 }
 0x1c5   : > { %2357 = vmatpush3.bf16.msra.mxu0 %v2354_v35 }
 0x1c6   : > { %2359 = vmatprep.subr.bf16.mxu0 %v2358_v44 }
 0x1c9   : > { %2361 = vmatpush3.bf16.msra.mxu0 %v2358_v44 }
 0x1ca   : > { %2363 = vmatprep.subr.bf16.mxu0 %v2362_v56 }
 0x1cd   : > { %2365 = vmatpush3.bf16.msra.mxu0 %v2362_v56  ;;  %v906_v56 = vld [vmem:[#allocation5 + $0x6a8] sm:$0xff] }
 0x1ce   : > { %2399 = vmatprep.subr.bf16.mxu0 %v3061_v63  ;;  %v2374_v61 = vpack.c.bf16 %v906_v56, %v905_v55 }
 0x263   : > { %v1708_v0 = vpop.f32.mrb[4].mxu0  ;;  %v1966_v51 = vpop.f32.mrb[2].mxu1 }
 0x264   : > { %v1709_v1 = vpop.f32.mrb[5].mxu0  ;;  %v723_v3 = vpop.f32.mrb[3].mxu1 }
 0x265   : > { %v1710_v4 = vadd.f32 %v1709_v1, %v1708_v0  ;;  %v890_v0 = vld [vmem:[#allocation5 + $0x628] sm:$0xff] }
 0x266   : > { %v2376_v1 = vpack.c.bf16 %v890_v0, %v889_v62 }
 0x267   : > { %v649_v5 = vadd.f32 %v1710_v4, %v1611_v2  ;;  %v1711_v6 = vpop.f32.mrb[6].mxu0 }
 0x268   : > { %v1712_v7 = vpop.f32.mrb[7].mxu0 }
 0x269   : > { %v724_v8 = vadd.f32 %v723_v3, %v649_v5  ;;  %v1713_v9 = vadd.f32 %v1712_v7, %v1711_v6  ;;  %v908_v3 = vld [vmem:[#allocation5 + $0x6b8] sm:$0xff]  ;;  %v891_v5 = vld [vmem:[#allocation5 + $0x630] sm:$0xff] }
 0x26a   : > { %v892_v6 = vld [vmem:[#allocation5 + $0x638] sm:$0xff] }
 0x26b   : > { %v654_v10 = vadd.f32 %v1713_v9, %v1611_v2  ;;  %v732_v17 = vmax.f32 %v724_v8, 0.0  ;;  %v907_v2 = vld [vmem:[#allocation5 + $0x6b0] sm:$0xff]  ;;  %v2380_v7 = vpack.c.bf16 %v892_v6, %v891_v5  ;;  %v924_v8 = vld [vmem:[#allocation5 + $0x738] sm:$0xff] }
 0x26c   : > { %v2378_v4 = vpack.c.bf16 %v908_v3, %v907_v2 }
 0x26d   : > { %v729_v11 = vadd.f32 %v1966_v51, %v654_v10  ;;  %v2406_v51 = vpack.c.bf16 %v922_v59, %v921_v58  ;;  %v909_v10 = vld [vmem:[#allocation5 + $0x6c0] sm:$0xff] }
 0x26e   : > { %v1613_v58 = vld [vmem:[#allocation7 + $0x3] ss:$0 sm:$0xff] }
 0x26f   : > { %v733_v14 = vmax.f32 %v729_v11, 0.0  ;;  %v910_v11 = vld [vmem:[#allocation5 + $0x6c8] sm:$0xff] }
 0x283   : > { %v2001_v13 = vpop.f32.mrb[8].mxu0 }
 0x284   : > { %v828_v15 = vadd.f32 %v2001_v13, %v1612_v12  ;;  %v822_v16 = vpop.f32.mrb[9].mxu0  ;;  %v893_v13 = vld [vmem:[#allocation5 + $0x640] sm:$0xff] }
 0x285   : > { %v823_v18 = vadd.f32 %v1612_v12, %v822_v16  ;;  %v2382_v12 = vpack.c.bf16 %v910_v11, %v909_v10  ;;  %v1302_v10 = vld [vmem:[#allocation5 + $0x790] sm:$0xff]  ;;  %v1303_v11 = vld [vmem:[#allocation5 + $0x798] sm:$0xff] }
 0x286   : > { %v832_v19 = vadd.f32 %v828_v15, %v733_v14  ;;  %v894_v14 = vld [vmem:[#allocation5 + $0x648] sm:$0xff]  ;;  %v925_v15 = vld [vmem:[#allocation5 + $0x740] sm:$0xff] }
 0x287   : > { %v831_v20 = vadd.f32 %v823_v18, %v732_v17  ;;  %v2384_v16 = vpack.c.bf16 %v894_v14, %v893_v13  ;;  %v926_v17 = vld [vmem:[#allocation5 + $0x748] sm:$0xff] }
 0x288   : > { %v3064_v21 = vmax.f32 %v832_v19, 0.0  ;;  %v2414_v18 = vpack.c.bf16 %v926_v17, %v925_v15  ;;  %v911_v19 = vld [vmem:[#allocation5 + $0x6d0] sm:$0xff] }
 0x289   : > { %v3066_v22 = vmax.f32 %v831_v20, 0.0  ;;  %v912_v20 = vld [vmem:[#allocation5 + $0x6d8] sm:$0xff] }
 0x28a   : > { %v940_v24 = vrot.slane %v3064_v21, 2  ;;  %v944_v47 = vrot.slane %v3064_v21, 4 }
 0x28b   : > { %v938_v25 = vrot.slane %v3066_v22, 2  ;;  %v943_v26 = vrot.slane %v3066_v22, 4 }
 0x28c   : > { %v960_v39 = vrot.slane %v944_v47, 4  ;;  %v958_v48 = vrot.slane %v940_v24, 4 }
 0x28d   : > { %v939_v33 = vsel %vm367_vm1, %v3069_v23, %v938_v25  ;;  %v941_v34 = vsel %vm367_vm1, %v938_v25, %v940_v24  ;;  %v945_v35 = vsel %vm942_vm3, %v943_v26, %v944_v47  ;;  %v955_v36 = vrot.slane %v943_v26, 4  ;;  %v895_v47 = vld [vmem:[#allocation5 + $0x650] sm:$0xff]  ;;  %v896_v25 = vld [vmem:[#allocation5 + $0x658] sm:$0xff] }
 0x28e   : > { %v952_v27 = vrot.slane %v939_v33, 4  ;;  %v953_v37 = vrot.slane %v941_v34, 4  ;;  %v956_v38 = vrot.slane %v945_v35, 4  ;;  %v951_v53 = vsel %vm942_vm3, %v3076_v29, %v943_v26  ;;  %v927_v26 = vld [vmem:[#allocation5 + $0x750] sm:$0xff]  ;;  %v914_v33 = vld [vmem:[#allocation5 + $0x6e8] sm:$0xff] }
 0x28f   : > { %v2386_v24 = vpack.c.bf16 %v912_v20, %v911_v19  ;;  %v2388_v28 = vpack.c.bf16 %v896_v25, %v895_v47  ;;  %v2418_v31 = vpack.c.bf16 %v928_v30, %v927_v26  ;;  %v2390_v34 = vpack.c.bf16 %v914_v33, %v913_v32  ;;  %v1305_v30 = vld [vmem:[#allocation5 + $0x7a8] sm:$0xff]  ;;  %v1306_v32 = vld [vmem:[#allocation5 + $0x7b0] sm:$0xff]  ;;  %v1307_v33 = vld [vmem:[#allocation5 + $0x7b8] sm:$0xff] }
 0x290   : > { %v954_v44 = vsel %vm942_vm3, %v952_v27, %v953_v37  ;;  %v957_v50 = vsel %vm942_vm3, %v955_v36, %v956_v38  ;;  %v961_v45 = vsel %vm942_vm3, %v956_v38, %v960_v39  ;;  %v959_v57 = vsel %vm942_vm3, %v953_v37, %v958_v48  ;;  %v898_v36 = vld [vmem:[#allocation5 + $0x668] sm:$0xff]  ;;  %v929_v27 = vld [vmem:[#allocation5 + $0x760] sm:$0xff] }
 0x291   : > { %1032 = vmatprep.mubr.f32.mxu1 %v954_v44  ;;  %2034 = vmatprep.mubr.f32.mxu0 %v957_v50  ;;  %v930_v38 = vld [vmem:[#allocation5 + $0x768] sm:$0xff]  ;;  %v900_v44 = vld [vmem:[#allocation5 + $0x678] sm:$0xff]  ;;  %v931_v50 = vld [vmem:[#allocation5 + $0x770] sm:$0xff]  ;;  %v2434_v20 = vpack.c.bf16 %v1303_v11, %v1302_v10 }
 0x292   : > { %1033 = vmatmul.mubr.f32.vlgmr.msra.gmra.mrb[4].mxu1 %v951_v53  ;;  %2035 = vmatmul.mubr.f32.vlgmr.msra.gmra.mrb[10].mxu0 %v961_v45  ;;  %v2422_v39 = vpack.c.bf16 %v930_v38, %v929_v27  ;;  %v932_v45 = vld [vmem:[#allocation5 + $0x778] sm:$0xff]  ;;  %v1301_v53 = vld [vmem:[#allocation5 + $0x788] sm:$0xff]  ;;  %v1310_v27 = vld [vmem:[#allocation5 + $0x7d0] sm:$0xff] }
 0x293   : > { %1037 = vmatprep.mubr.f32.mxu1 %v959_v57  ;;  %2369 = vmatpush3.bf16.msra.mxu1 %v2368_v42  ;;  %v899_v42 = vld [vmem:[#allocation5 + $0x670] sm:$0xff]  ;;  %v2426_v49 = vpack.c.bf16 %v932_v45, %v931_v50  ;;  %v1614_v11 = vld [vmem:[#allocation7 + $0x4] ss:$0 sm:$0xff] }
 0x294   : > { %2401 = vmatpush3.bf16.msra.mxu0 %v3061_v63  ;;  %2371 = vmatprep.subr.bf16.mxu1 %v2370_v43  ;;  %v923_v63 = vld [vmem:[#allocation5 + $0x730] sm:$0xff]  ;;  %v2394_v43 = vpack.c.bf16 %v916_v41, %v915_v40  ;;  %v2396_v48 = vpack.c.bf16 %v900_v44, %v899_v42  ;;  %v1313_v40 = vld [vmem:[#allocation5 + $0x7e8] sm:$0xff] }
 0x295   : > { %2403 = vmatprep.subr.bf16.mxu0 %v2402_v54  ;;  %v2410_v9 = vpack.c.bf16 %v924_v8, %v923_v63  ;;  %v1314_v42 = vld [vmem:[#allocation5 + $0x7f0] sm:$0xff]  ;;  %v1398_v44 = vld [vmem:[#allocation8] sm:$0xff] }
 0x296   : > { %1038 = vmatmul.mubr.f32.gmra.mrb[6].mxu1 %v945_v35  ;;  %v897_v35 = vld [vmem:[#allocation5 + $0x660] sm:$0xff]  ;;  %v1399_v50 = vld [vmem:[#allocation8 + $0x8] sm:$0xff] }
 0x297   : > { %2373 = vmatpush3.bf16.msra.mxu1 %v2372_v60  ;;  %v2392_v37 = vpack.c.bf16 %v898_v36, %v897_v35  ;;  %v1308_v35 = vld [vmem:[#allocation5 + $0x7c0] sm:$0xff]  ;;  %v1309_v36 = vld [vmem:[#allocation5 + $0x7c8] sm:$0xff]  ;;  %v2463_v45 = vpack.c.bf16 %v1399_v50, %v1398_v44 }
 0x298   : > { %2405 = vmatpush3.bf16.msra.mxu0 %v2402_v54  ;;  %2375 = vmatprep.subr.bf16.mxu1 %v2374_v61  ;;  %v2430_v54 = vpack.c.bf16 %v1301_v53, %v1300_v52  ;;  %v1401_v52 = vld [vmem:[#allocation8 + $0x18] sm:$0xff] }
 0x299   : > { %2407 = vmatprep.subr.bf16.mxu0 %v2406_v51 }
 0x29b   : > { %2377 = vmatpush3.bf16.msra.mxu1 %v2376_v1 }
 0x29c   : > { %2409 = vmatpush3.bf16.msra.mxu0 %v2406_v51  ;;  %2379 = vmatprep.subr.bf16.mxu1 %v2378_v4 }
 0x29d   : > { %2411 = vmatprep.subr.bf16.mxu0 %v2410_v9 }
 0x29f   : > { %2381 = vmatpush3.bf16.msra.mxu1 %v2380_v7 }
 0x2a0   : > { %2413 = vmatpush3.bf16.msra.mxu0 %v2410_v9  ;;  %2383 = vmatprep.subr.bf16.mxu1 %v2382_v12 }
 0x2a1   : > { %2415 = vmatprep.subr.bf16.mxu0 %v2414_v18 }
 0x2a3   : > { %2385 = vmatpush3.bf16.msra.mxu1 %v2384_v16 }
 0x2a4   : > { %2417 = vmatpush3.bf16.msra.mxu0 %v2414_v18  ;;  %2387 = vmatprep.subr.bf16.mxu1 %v2386_v24 }
 0x2a5   : > { %2419 = vmatprep.subr.bf16.mxu0 %v2418_v31 }
 0x2a7   : > { %2389 = vmatpush3.bf16.msra.mxu1 %v2388_v28  ;;  %v1304_v28 = vld [vmem:[#allocation5 + $0x7a0] sm:$0xff] }
 0x2a8   : > { %2421 = vmatpush3.bf16.msra.mxu0 %v2418_v31  ;;  %2391 = vmatprep.subr.bf16.mxu1 %v2390_v34  ;;  %v2438_v31 = vpack.c.bf16 %v1305_v30, %v1304_v28  ;;  %v2442_v34 = vpack.c.bf16 %v1307_v33, %v1306_v32 }
 0x2a9   : > { %2423 = vmatprep.subr.bf16.mxu0 %v2422_v39 }
 0x2ab   : > { %2393 = vmatpush3.bf16.msra.mxu1 %v2392_v37  ;;  %v1311_v37 = vld [vmem:[#allocation5 + $0x7d8] sm:$0xff] }
 0x2ac   : > { %2425 = vmatpush3.bf16.msra.mxu0 %v2422_v39  ;;  %2395 = vmatprep.subr.bf16.mxu1 %v2394_v43  ;;  %v2450_v38 = vpack.c.bf16 %v1311_v37, %v1310_v27  ;;  %v1312_v39 = vld [vmem:[#allocation5 + $0x7e0] sm:$0xff]  ;;  %v1315_v43 = vld [vmem:[#allocation5 + $0x7f8] sm:$0xff] }
 0x2ad   : > { %2427 = vmatprep.subr.bf16.mxu0 %v2426_v49  ;;  %v2454_v41 = vpack.c.bf16 %v1313_v40, %v1312_v39 }
 0x2af   : > { %2397 = vmatpush3.bf16.msra.mxu1 %v2396_v48  ;;  %v2765_v48 = vmov 0.0|0.0  }
 0x2b0   : > { %2429 = vmatpush3.bf16.msra.mxu0 %v2426_v49  ;;  %2431 = vmatprep.subr.bf16.mxu1 %v2430_v54  ;;  %v1400_v49 = vld [vmem:[#allocation8 + $0x10] sm:$0xff] }
 0x2b1   : > { %2462 = vmatprep.subr.bf16.mxu0 %v2765_v48  ;;  %v2466_v53 = vpack.c.bf16 %v1401_v52, %v1400_v49 }
 0x365   : > { %v1782_v55 = vpop.f32.mrb[4].mxu1  ;;  %v2036_v56 = vpop.f32.mrb[10].mxu0 }
 0x366   : > { %v1783_v57 = vpop.f32.mrb[5].mxu1  ;;  %v1109_v59 = vpop.f32.mrb[11].mxu0 }
 0x367   : > { %v1784_v60 = vadd.f32 %v1783_v57, %v1782_v55  ;;  %v1403_v55 = vld [vmem:[#allocation8 + $0x28] sm:$0xff]  ;;  %v1404_v57 = vld [vmem:[#allocation8 + $0x30] sm:$0xff] }
 0x369   : > { %v1035_v61 = vadd.f32 %v1784_v60, %v1613_v58  ;;  %v1785_v62 = vpop.f32.mrb[6].mxu1  ;;  %v1407_v60 = vld [vmem:[#allocation8 + $0x48] sm:$0xff] }
 0x36a   : > { %v1786_v0 = vpop.f32.mrb[7].mxu1 }
 0x36b   : > { %v1110_v51 = vadd.f32 %v1109_v59, %v1035_v61  ;;  %v1787_v1 = vadd.f32 %v1786_v0, %v1785_v62  ;;  %v1408_v62 = vld [vmem:[#allocation8 + $0x50] sm:$0xff]  ;;  %v1409_v0 = vld [vmem:[#allocation8 + $0x58] sm:$0xff] }
 0x36d   : > { %v1118_v2 = vmax.f32 %v1110_v51, 0.0  ;;  %v1040_v3 = vadd.f32 %v1787_v1, %v1613_v58  ;;  %v1405_v58 = vld [vmem:[#allocation8 + $0x38] sm:$0xff]  ;;  %v2478_v51 = vpack.c.bf16 %v1409_v0, %v1408_v62  ;;  %v1410_v1 = vld [vmem:[#allocation8 + $0x60] sm:$0xff] }
 0x36e   : > { %v2472_v59 = vpack.c.bf16 %v1405_v58, %v1404_v57 }
 0x36f   : > { %v1122_v4 = vrot.slane %v1118_v2, 2  ;;  %v1115_v5 = vadd.f32 %v2036_v56, %v1040_v3  ;;  %v1126_v63 = vrot.slane %v1118_v2, 4  ;;  %v1411_v2 = vld [vmem:[#allocation8 + $0x68] sm:$0xff] }
 0x370   : > { %v2481_v3 = vpack.c.bf16 %v1411_v2, %v1410_v1 }
 0x371   : > { %v1119_v6 = vmax.f32 %v1115_v5, 0.0  ;;  %v1123_v9 = vsel %vm367_vm1, %v3069_v23, %v1122_v4  ;;  %v1137_v18 = vrot.slane %v1126_v63, 4  ;;  %v1133_v26 = vsel %vm942_vm3, %v3076_v29, %v1126_v63  ;;  %v1413_v5 = vld [vmem:[#allocation8 + $0x78] sm:$0xff] }
 0x372   : > { %v1134_v16 = vrot.slane %v1123_v9, 4  ;;  %v2446_v29 = vpack.c.bf16 %v1309_v36, %v1308_v35 }
 0x373   : > { %v1124_v7 = vrot.slane %v1119_v6, 2  ;;  %v1127_v8 = vrot.slane %v1119_v6, 4 }
 0x375   : > { %v1125_v12 = vsel %vm367_vm1, %v1122_v4, %v1124_v7  ;;  %v1128_v13 = vsel %vm942_vm3, %v1126_v63, %v1127_v8  ;;  %v1142_v14 = vrot.slane %v1127_v8, 4  ;;  %v1140_v15 = vrot.slane %v1124_v7, 4  ;;  %v1412_v4 = vld [vmem:[#allocation8 + $0x70] sm:$0xff] }
 0x376   : > { %v1135_v17 = vrot.slane %v1125_v12, 4  ;;  %v1138_v19 = vrot.slane %v1128_v13, 4  ;;  %v2484_v6 = vpack.c.bf16 %v1413_v5, %v1412_v4 }
 0x378   : > { %v1136_v24 = vsel %vm942_vm3, %v1134_v16, %v1135_v17  ;;  %v1139_v47 = vsel %vm942_vm3, %v1137_v18, %v1138_v19  ;;  %v1143_v25 = vsel %vm942_vm3, %v1138_v19, %v1142_v14  ;;  %v1141_v23 = vsel %vm942_vm3, %v1135_v17, %v1140_v15  ;;  %v1615_v16 = vld [vmem:[#allocation7 + $0x5] ss:$0 sm:$0xff] }
 0x379   : > { %1214 = vmatprep.mubr.f32.mxu1 %v1136_v24  ;;  %2069 = vmatprep.mubr.f32.mxu0 %v1139_v47 }
 0x37a   : > { %1215 = vmatmul.mubr.f32.vlgmr.msra.gmra.mrb[8].mxu1 %v1133_v26  ;;  %2070 = vmatmul.mubr.f32.vlgmr.msra.gmra.mrb[12].mxu0 %v1143_v25  ;;  %v1397_v25 = vld [vmem:[#allocation7 + $0x6] sm:$0x1] }
 0x37b   : > { %2433 = vmatpush3.bf16.msra.mxu1 %v2430_v54  ;;  %1218 = vmatprep.mubr.f32.mxu1 %v1141_v23  ;;  %v1402_v54 = vld [vmem:[#allocation8 + $0x20] sm:$0xff] }
 0x37c   : > { %2435 = vmatprep.subr.bf16.mxu1 %v2434_v20  ;;  %2464 = vmatpush3.bf16.msra.mxu0 %v2463_v45  ;;  %v2469_v56 = vpack.c.bf16 %v1403_v55, %v1402_v54 }
 0x37d   : > { %2465 = vmatprep.subr.bf16.mxu0 %v2765_v48  ;;  %2139 = vmatprep.mubr.msk.f32.mxu0 %vm2766_vm4, %v2764_v46 }
 0x37e   : > { %1219 = vmatmul.mubr.f32.gmra.mrb[10].mxu1 %v1128_v13 }
 0x37f   : > { %2437 = vmatpush3.bf16.msra.mxu1 %v2434_v20  ;;  %2104 = vmatprep.mubr.f32.mxu1 %v3066_v22  ;;  %v2458_v22 = vpack.c.bf16 %v1315_v43, %v1314_v42 }
 0x380   : > { %2439 = vmatprep.subr.bf16.mxu1 %v2438_v31  ;;  %2467 = vmatpush3.bf16.msra.mxu0 %v2466_v53 }
 0x381   : > { %2468 = vmatprep.subr.bf16.mxu0 %v2765_v48 }
 0x383   : > { %2441 = vmatpush3.bf16.msra.mxu1 %v2438_v31 }
 0x384   : > { %2443 = vmatprep.subr.bf16.mxu1 %v2442_v34  ;;  %2470 = vmatpush3.bf16.msra.mxu0 %v2469_v56 }
 0x385   : > { %2471 = vmatprep.subr.bf16.mxu0 %v2765_v48 }
 0x387   : > { %2445 = vmatpush3.bf16.msra.mxu1 %v2442_v34 }
 0x388   : > { %2447 = vmatprep.subr.bf16.mxu1 %v2446_v29  ;;  %2473 = vmatpush3.bf16.msra.mxu0 %v2472_v59 }
 0x389   : > { %2474 = vmatprep.subr.bf16.mxu0 %v2765_v48 }
 0x38b   : > { %2449 = vmatpush3.bf16.msra.mxu1 %v2446_v29 }
 0x38c   : > { %2451 = vmatprep.subr.bf16.mxu1 %v2450_v38 }
 0x38f   : > { %2453 = vmatpush3.bf16.msra.mxu1 %v2450_v38 }
 0x390   : > { %2455 = vmatprep.subr.bf16.mxu1 %v2454_v41 }
 0x393   : > { %2457 = vmatpush3.bf16.msra.mxu1 %v2454_v41 }
 0x394   : > { %2459 = vmatprep.subr.bf16.mxu1 %v2458_v22 }
 0x397   : > { %2461 = vmatpush3.bf16.msra.mxu1 %v2458_v22 }
 0x39a   : > { %2105 = vmatmul.mubr.f32.vlgmr.msra.gmra.mrb[12].mxu1 %v3064_v21  ;;  %v1406_v21 = vld [vmem:[#allocation8 + $0x40] sm:$0xff] }
 0x39b   : > { %v2475_v61 = vpack.c.bf16 %v1407_v60, %v1406_v21 }
 0x39d   : > { %2476 = vmatpush3.bf16.msra.mxu0 %v2475_v61 }
 0x39e   : > { %2477 = vmatprep.subr.bf16.mxu0 %v2765_v48 }
 0x3a1   : > { %2479 = vmatpush3.bf16.msra.mxu0 %v2478_v51 }
 0x3a2   : > { %2480 = vmatprep.subr.bf16.mxu0 %v2765_v48 }
 0x3a5   : > { %2482 = vmatpush3.bf16.msra.mxu0 %v2481_v3 }
 0x3a6   : > { %2483 = vmatprep.subr.bf16.mxu0 %v2765_v48 }
 0x3a9   : > { %2485 = vmatpush3.bf16.msra.mxu0 %v2484_v6 }
 0x44d   : > { %v1838_v63 = vpop.f32.mrb[8].mxu1  ;;  %v2071_v7 = vpop.f32.mrb[12].mxu0 }
 0x44e   : > { %v1839_v8 = vpop.f32.mrb[9].mxu1  ;;  %v1290_v9 = vpop.f32.mrb[13].mxu0 }
 0x451   : > { %v1841_v10 = vpop.f32.mrb[10].mxu1 }
 0x452   : > { %v1842_v12 = vpop.f32.mrb[11].mxu1 }
 0x453   : > { %v1843_v13 = vadd.f32 %v1842_v12, %v1841_v10 }
 0x455   : > { %v1221_v14 = vadd.f32 %v1843_v13, %v1614_v11 }
 0x457   : > { %v1295_v15 = vadd.f32 %v2071_v7, %v1221_v14 }
 0x459   : > { %v1298_v18 = vmax.f32 %v1295_v15, 0.0 }
 0x46d   : > { %v2106_v17 = vpop.f32.mrb[12].mxu1 }
 0x46e   : > { %v1392_v19 = vadd.f32 %v2106_v17, %v1615_v16  ;;  %v1387_v20 = vpop.f32.mrb[13].mxu1 }
 0x470   : > { %v1395_v24 = vadd.f32 %v1392_v19, %v1298_v18 }
 0x472   : > { %v1396_v46 = vmax.f32 %v1395_v24, 0.0 }
 0x474   : > { %v1415_v47 = vrot.slane %v1396_v46, 7 }
 0x476   : > { %2140 = vmatmul.mubr.f32.vlgmr.msra.gmra.mrb[14].mxu0 %v1415_v47 }
 0x549   : > { %v1483_v23 = vpop.f32.mrb[14].mxu0 }
 0x54a   : > { %v1484_v26 = vadd.f32 %v1483_v23, %v1397_v25  ;;  %v2141_v28 = vpop.f32.mrb[15].mxu0 }
 0x54c   : > { %1487 = vst [vmem:[%s256_s23] sm:$0x1] %v1484_v26 }
 0x54d   : > { %2695 = shalt.err (!%p2692_p4)
}
 0x54e   : > { %s2696_s5 = scalar_lea.hbm %s3107_s8, 16  ;;  %s2700_s11 = scalar_lea.hbm %s3155_s4, 32 }
 0x54f   : > { %p2697_p9 = scmp.ne.s32.totalorder %s3107_s8, %s2696_s5  ;;  %p2701_p8 = scmp.lt.u32.totalorder %s3107_s8, %s3155_s4 }
 0x550   : > { %p2702_p13 = scmp.lt.u32.totalorder %s2700_s11, %s2696_s5  ;;  %p2704_p10 = scmp.lt.u32.totalorder %s2696_s5, %s3107_s8 }
 0x551   : > { %p2698_p0 = pnand %p2697_p9, %p2944_p5 }
 0x552   : > { %p2703_p6 = por %p2702_p13, %p2701_p8 }
 0x553   : > { %p2699_p11 = pneg %p2698_p0 }
 0x554   : > { %p2705_p3 = por %p2704_p10, %p2703_p6 }
 0x556   : > { %p2706_p7 = pnand %p2705_p3, %p2699_p11 }
 0x558   : > { %2709 = shalt.err (!%p2706_p7)
}
 0x559   : > { %2500 = dma.vmem_to_hbm [thread:$0]  (%p2944_p5), %s3109_s14, 16, %s3107_s8, %s1489_s9  }
 0x55a PF: > { %s1513_s30 = sand.u32 1, %s2744_s15   ;;  %p3173_p12 = scmp.ne.s32.totalorder %s3160_s22, 0 }
 0x55b   : > { %p3174_p1 = scmp.ge.s32.totalorder %s2756_s18, 2  ;;  %s1514_s21 = scalar_lea.sflag [#allocation4], %s1513_s30 }
 0x55d   : > { %p2517_p2 = pnand %p3174_p1, %p3173_p12 }
 0x55f   : > { %2739 = dma.done.wait (!%p2517_p2), %s1514_s21, 16  }
 0x560   : > { %2741 = vsyncadd (!%p2517_p2), %s1514_s21, 4294967280  ;;  %p19_p4 = scmp.ge.s32.totalorder %s2930_s10, 4   ;;  %s3175_s15 = smov %s2748_s16 }
 0x561   : > { %s3176_s16 = smov %s2752_s17  ;;  %s3177_s17 = smov %s2940_s12 }
 0x562   : > { %s3178_s18 = smov %s2930_s10  ;;  %21 = sbr.rel (!%p19_p4) target bundleno = 7 (0x7), region = 98 }
 0x569   :  { %1518 = vsyncpa [#allocation3], 1 }
 0x56a   :  { %1520 = vsyncpa [#allocation3 + $0x1], 1 }
 0x56b   :  { %1521 = vsyncpa [#allocation6], 1 }
 0x56c   :  { %1522 = vsyncpa [#allocation9], 1 }
 0x56d   :  { %1523 = vsyncpa [#allocation4], 1 }
 0x56e   :  { %1525 = vsyncpa [#allocation4 + $0x1], 1 }

</bundles_post_ra>
